<compile_context>
chip_gen: v7x
topology: tpu7x:2x2x1
jax: 0.10.0
libtpu: 0.0.40
codegen_flags: <defaults>
</compile_context>

<pallas_src>
import functools
import math

import numpy as np
import jax
import jax.numpy as jnp
from jax import lax
from jax.experimental import pallas as pl
from jax.experimental.pallas import tpu as pltpu


def _round_up(x, m):
    return ((x + m - 1) // m) * m


def _vmem_capacity_bytes():
    try:
        return int(pltpu.get_tpu_info().vmem_capacity_bytes)
    except Exception:
        return 64 << 20  # conservative (v7x per-core physical VMEM)


def _vmem_bytes_estimate(tm, hidden, a_pad, weight_buffers):
    # bf16 resident weights: keysT + vals (2*H*a_pad) + wqg/wg2/wo (4*H*H).
    weights = weight_buffers * 2 * (2 * hidden * a_pad + 4 * hidden * hidden)
    small = weight_buffers * 4 * (4 * hidden + a_pad)          # f32 biases + mask row
    io = 2 * 4 * (2 * tm * hidden + tm + a_pad)                # double-buffered x/out/conf/usage
    tmp = 4 * tm * (6 * a_pad + 6 * hidden)                    # live f32 temporaries
    return weights + small + io + tmp


def _pick_tile_m(m_tokens, hidden, a_pad, budget_bytes):
    m128 = _round_up(m_tokens, 128)
    for tm in (512, 256, 128):
        if tm <= m128 and _vmem_bytes_estimate(tm, hidden, a_pad, 1) <= budget_bytes:
            return tm
    return 128


def _kg_capsule_kernel(k, n_tokens, tile_m, hidden, a_pad, eps,
                       x_ref, keysT_ref, vals_ref, wqg_ref, wg2_ref, wo_ref,
                       bg_ref, bo_ref, g_ref, b_ref, bias_ref,
                       out_ref, conf_ref, usage_ref):
    x_in = x_ref[...]
    x = x_in.astype(jnp.float32)                     # [tm, H]
    x_bf = x_in.astype(jnp.bfloat16)

    # Fused Q / gate-x projection: one x @ [H, 2H] matmul, then split.
    # (1/sqrt(H) score scale is folded into the Q half of the weight.)
    qg = jnp.dot(x_bf, wqg_ref[...], preferred_element_type=jnp.float32)
    q = qg[:, :hidden].astype(jnp.bfloat16)
    gx = qg[:, hidden:]                              # x-half of gate pre-activation

    # Attention scores vs. precomputed, pre-transposed keys: canonical matmul.
    scores = jnp.dot(q, keysT_ref[...], preferred_element_type=jnp.float32)
    scores = scores + bias_ref[...]                  # additive -1e30 mask on padded cols

    # Softmax over active knowledge nodes (max entry of e is exactly 1).
    m = jnp.max(scores, axis=-1, keepdims=True)
    e = jnp.exp(scores - m)
    denom = jnp.sum(e, axis=-1, keepdims=True)
    r = pl.reciprocal(denom, approx=True)
    r = r * (2.0 - denom * r)                        # one Newton-Raphson step (VPU, ~free)
    w = e * r                                        # [tm, A_pad]

    # Top-k via iterative max -> threshold mask.  max(w) == r bit-exactly
    # (max(e)==1), so the first max pass is skipped.
    # TODO(synk): diverges from torch.topk under exact ties (all tied entries
    # at the running max are kept/knocked out together).
    thr = r
    running = jnp.where(w >= thr, -1.0, w)
    for _ in range(k - 1):
        thr = jnp.max(running, axis=-1, keepdims=True)
        running = jnp.where(running >= thr, -1.0, running)
    mw = jnp.where(w >= thr, w, 0.0)                 # [tm, A_pad] f32

    agg = jnp.dot(mw.astype(jnp.bfloat16), vals_ref[...],
                  preferred_element_type=jnp.float32)   # [tm, H]

    # knowledge_gate: sigmoid(cat([x, agg]) @ Wg.T + bg) as two matmuls.
    gate = jax.nn.sigmoid(
        gx
        + jnp.dot(agg.astype(jnp.bfloat16), wg2_ref[...],
                  preferred_element_type=jnp.float32)
        + bg_ref[...])
    enhanced = gate * agg + (1.0 - gate) * x

    # output_projection: Linear + LayerNorm (one-pass stats), then residual.
    proj = jnp.dot(enhanced.astype(jnp.bfloat16), wo_ref[...],
                   preferred_element_type=jnp.float32) + bo_ref[...]
    mu = jnp.mean(proj, axis=-1, keepdims=True)
    mu2 = jnp.mean(proj * proj, axis=-1, keepdims=True)
    var = mu2 - mu * mu
    ln = (proj - mu) * lax.rsqrt(var + eps) * g_ref[...] + b_ref[...]
    out_ref[...] = (ln + x).astype(out_ref.dtype)

    # Confidence = max top-k weight = max softmax weight = r.  Small
    # [tm,1]->[1,tm] transpose gives a lane-dense, unmasked store.
    conf_ref[...] = jnp.transpose(r, (1, 0))

    # Per-tile partial node usage (reduced outside the kernel so the grid
    # stays "parallel").  Mask out token rows beyond the true token count.
    if n_tokens % tile_m != 0:
        row = (pl.program_id(0) * tile_m
               + lax.broadcasted_iota(jnp.int32, (tile_m, 1), 0))
        mw = jnp.where(row < n_tokens, mw, 0.0)
    usage_ref[...] = jnp.sum(mw, axis=0, keepdims=True).reshape(1, 1, a_pad)


def kg_capsule_forward(sequence, params, *, n_active, top_k=5, tile_m=None,
                       input_bf16=False, vmem_limit_bytes=None):
    """Pallas forward of KGCapsuleTransformer (eval mode, attention_mask=None).

    Returns (enhanced_sequence [B,S,H], confidence [B,S], node_usage [A]).
    """
    # TODO(synk): attention_mask per-position early-skip and training-time
    # knowledge-update buffering / node creation are host-side stateful
    # control flow; omitted here.  node_usage_count in-place accumulation is
    # returned as an output array instead of mutated state.
    B, S, H = sequence.shape
    M = B * S
    A = int(n_active)
    assert A >= 1
    k = min(top_k, A)
    eps = 1e-5
    f32, bf16 = jnp.float32, jnp.bfloat16

    # Pad active-knowledge axis to a lane-dense multiple of 128.
    a_pad = _round_up(max(A, 128), 128)

    # ------ tiling (VMEM-budget aware; ensure grid >= 2 for v7x megacore) ----
    cap = _vmem_capacity_bytes()
    if tile_m is None:
        tile_m = _pick_tile_m(M, H, a_pad, int(0.7 * cap))
    else:
        tile_m = max(128, (int(tile_m) // 128) * 128)
    if M <= 128:
        tm = _round_up(M, 8)                    # single small tile
    else:
        tm = min(tile_m, _round_up(M, 128))
        half = max(128, _round_up(_round_up(M, 128) // 2, 128))
        tm = min(tm, half)                      # >= 2 tiles -> both v7x cores
    m_pad = _round_up(M, tm)
    grid = m_pad // tm
    if grid > 1:
        assert tm % 128 == 0

    if vmem_limit_bytes is None:
        est = _vmem_bytes_estimate(tm, H, a_pad, 2)
        vmem_limit_bytes = int(min(max(32 << 20, 2 * est), cap))

    # ------ inputs ----------------------------------------------------------
    x = sequence.reshape(M, H)
    x = x.astype(bf16) if input_bf16 else x.astype(f32)
    if m_pad > M:
        x = jnp.pad(x, ((0, m_pad - M), (0, 0)))

    # Hoisted, loop-invariant knowledge key/value projections (once per call).
    # Keys are pre-transposed so the in-kernel score matmul is canonical.
    ak = params["knowledge_embeddings"][:A].astype(f32)
    keys = jnp.dot(ak, params["wkT"], preferred_element_type=f32)
    vals = jnp.dot(ak, params["wvT"], preferred_element_type=f32)
    if a_pad > A:
        keys = jnp.pad(keys, ((0, a_pad - A), (0, 0)))
        vals = jnp.pad(vals, ((0, a_pad - A), (0, 0)))
    keysT = jnp.transpose(keys).astype(bf16)           # [H, A_pad]
    vals = vals.astype(bf16)                            # [A_pad, H]

    # Fuse Q + gate-x weights (same LHS); fold 1/sqrt(H) into the Q weight.
    scale = 1.0 / float(np.sqrt(H))
    wqg = jnp.concatenate([params["wqT"] * scale, params["wg1T"]],
                          axis=1).astype(bf16)          # [H, 2H]
    wg2 = params["wg2T"].astype(bf16)
    wo = params["woT"].astype(bf16)
    bg = params["bg"].astype(f32)
    bo = params["bo"].astype(f32)
    gamma = params["ln_gamma"].astype(f32)
    beta = params["ln_beta"].astype(f32)

    # Additive mask row for padded score columns.
    bias = jnp.where(jnp.arange(a_pad) < A, 0.0, -1e30).astype(f32)[None, :]

    kernel = functools.partial(_kg_capsule_kernel, k, M, tm, H, a_pad, eps)

    def run(single_buffer):
        if single_buffer and hasattr(pl, "Buffered"):
            kw = dict(pipeline_mode=pl.Buffered(1))     # grid-invariant -> 1 buffer
        else:
            kw = {}

        def const(shape):
            nd = len(shape)
            return pl.BlockSpec(shape, lambda *_, _n=nd: (0,) * _n, **kw)

        return pl.pallas_call(
            kernel,
            out_shape=(
                jax.ShapeDtypeStruct((m_pad, H), f32),
                jax.ShapeDtypeStruct((1, m_pad), f32),        # lane-dense confidence
                jax.ShapeDtypeStruct((grid, 1, a_pad), f32),  # per-tile usage partials
            ),
            grid=(grid,),
            in_specs=[
                pl.BlockSpec((tm, H), lambda i: (i, 0)),      # token tile
                const((H, a_pad)),                            # keys^T (precomputed)
                const((a_pad, H)),                            # values (precomputed)
                const((H, 2 * H)),                            # fused WqT|Wg1T
                const((H, H)),                                # Wg2T
                const((H, H)),                                # WoT
                const((1, H)), const((1, H)),                 # bg, bo
                const((1, H)), const((1, H)),                 # LN gamma, beta
                const((1, a_pad)),                            # score mask row
            ],
            out_specs=(
                pl.BlockSpec((tm, H), lambda i: (i, 0)),
                pl.BlockSpec((1, tm), lambda i: (0, i)),
                pl.BlockSpec((1, 1, a_pad), lambda i: (i, 0, 0)),
            ),
            compiler_params=pltpu.CompilerParams(
                dimension_semantics=("parallel",),
                vmem_limit_bytes=vmem_limit_bytes),
        )(x, keysT, vals, wqg, wg2, wo, bg, bo, gamma, beta, bias)

    try:
        out, conf, usage = run(True)
    except Exception:
        # Fallback: default (double) buffering if Buffered(1) is unsupported.
        out, conf, usage = run(False)

    enhanced = out[:M].reshape(B, S, H)
    confidence = conf[0, :M].reshape(B, S)
    node_usage = jnp.sum(usage[:, 0, :], axis=0)[:A]
    return enhanced, confidence, node_usage


def init_params(key, hidden_dim, max_nodes):
    """Deterministic synthetic parameters matching the module's shapes.

    Linear weights are stored pre-transposed ([in, out]) so the kernel computes
    y = x @ W_T, equivalent to torch's x @ W.T.
    """
    ks = jax.random.split(key, 7)
    s = 1.0 / math.sqrt(hidden_dim)
    f32 = jnp.float32
    return {
        "knowledge_embeddings":
            jax.random.normal(ks[0], (max_nodes, hidden_dim), f32) * 0.02,
        "wqT": jax.random.normal(ks[1], (hidden_dim, hidden_dim), f32) * s,
        "wkT": jax.random.normal(ks[2], (hidden_dim, hidden_dim), f32) * s,
        "wvT": jax.random.normal(ks[3], (hidden_dim, hidden_dim), f32) * s,
        "wg1T": jax.random.normal(ks[4], (hidden_dim, hidden_dim), f32) * s,
        "wg2T": jax.random.normal(ks[5], (hidden_dim, hidden_dim), f32) * s,
        "bg": jnp.zeros((1, hidden_dim), f32),
        "woT": jax.random.normal(ks[6], (hidden_dim, hidden_dim), f32) * s,
        "bo": jnp.zeros((1, hidden_dim), f32),
        "ln_gamma": jnp.ones((1, hidden_dim), f32),
        "ln_beta": jnp.zeros((1, hidden_dim), f32),
    }


def reference_forward(sequence, params, *, n_active, top_k=5):
    """Pure-JAX reference mirroring the PyTorch forward (eval mode)."""
    B, S, H = sequence.shape
    x = sequence.reshape(-1, H)
    A = int(n_active)
    k = min(top_k, A)
    ak = params["knowledge_embeddings"][:A]
    hp = jax.lax.Precision.HIGHEST
    q = jnp.dot(x, params["wqT"], precision=hp)
    keys = jnp.dot(ak, params["wkT"], precision=hp)
    vals = jnp.dot(ak, params["wvT"], precision=hp)
    scores = jnp.dot(q, keys.T, precision=hp) / np.sqrt(H)
    w = jax.nn.softmax(scores, axis=-1)
    tw, ti = jax.lax.top_k(w, k)
    agg = jnp.sum(vals[ti] * tw[..., None], axis=1)
    gate = jax.nn.sigmoid(jnp.dot(x, params["wg1T"], precision=hp)
                          + jnp.dot(agg, params["wg2T"], precision=hp)
                          + params["bg"])
    enh = gate * agg + (1.0 - gate) * x
    proj = jnp.dot(enh, params["woT"], precision=hp) + params["bo"]
    mu = proj.mean(-1, keepdims=True)
    var = ((proj - mu) ** 2).mean(-1, keepdims=True)
    ln = (proj - mu) / jnp.sqrt(var + 1e-5) * params["ln_gamma"] + params["ln_beta"]
    out = ln + x
    conf = tw.max(-1)
    return out.reshape(B, S, H), conf.reshape(B, S)


if __name__ == "__main__":
    B, S, H = 2, 8, 128
    MAX_NODES, N_ACTIVE, TOP_K = 64, 16, 5

    key = jax.random.PRNGKey(0)
    pkey, xkey = jax.random.split(key)
    params = init_params(pkey, H, MAX_NODES)
    sequence = jax.random.normal(xkey, (B, S, H), jnp.float32)

    out, conf, usage = kg_capsule_forward(
        sequence, params, n_active=N_ACTIVE, top_k=TOP_K)
    jax.block_until_ready((out, conf, usage))

    ref_out, ref_conf = reference_forward(
        sequence, params, n_active=N_ACTIVE, top_k=TOP_K)

    assert out.shape == (B, S, H)
    assert conf.shape == (B, S)
    assert usage.shape == (N_ACTIVE,)
    np.testing.assert_allclose(np.asarray(out), np.asarray(ref_out),
                               rtol=5e-2, atol=5e-2)
    np.testing.assert_allclose(np.asarray(conf), np.asarray(ref_conf),
                               rtol=5e-2, atol=5e-2)
    print("KERNEL_OK")
</pallas_src>

<mosaic_0001>
module attributes {stable_mosaic.version = 11 : i64} {
  func.func @_kg_capsule_kernel(%arg0: i32, %arg1: memref<16x128xf32, #tpu.memory_space<vmem>>, %arg2: memref<128x128xbf16, #tpu.memory_space<vmem>>, %arg3: memref<128x128xbf16, #tpu.memory_space<vmem>>, %arg4: memref<128x256xbf16, #tpu.memory_space<vmem>>, %arg5: memref<128x128xbf16, #tpu.memory_space<vmem>>, %arg6: memref<128x128xbf16, #tpu.memory_space<vmem>>, %arg7: memref<1x128xf32, #tpu.memory_space<vmem>>, %arg8: memref<1x128xf32, #tpu.memory_space<vmem>>, %arg9: memref<1x128xf32, #tpu.memory_space<vmem>>, %arg10: memref<1x128xf32, #tpu.memory_space<vmem>>, %arg11: memref<1x128xf32, #tpu.memory_space<vmem>>, %arg12: memref<16x128xf32, #tpu.memory_space<vmem>>, %arg13: memref<1x16xf32, #tpu.memory_space<vmem>>, %arg14: memref<1x1x128xf32, #tpu.memory_space<vmem>>) attributes {dimension_semantics = [#tpu.dimension_semantics<parallel>], iteration_bounds = array<i64: 1>, scalar_prefetch = 0 : i64, scratch_operands = 0 : i64, tpu.core_type = #tpu.core_type<tc>, window_params = [{transform_indices = @transform_0, window_bounds = array<i64: 16, 128>}, {pipeline_mode = #tpu.pipeline_mode<synchronous>, transform_indices = @transform_1, window_bounds = array<i64: 128, 128>}, {pipeline_mode = #tpu.pipeline_mode<synchronous>, transform_indices = @transform_2, window_bounds = array<i64: 128, 128>}, {pipeline_mode = #tpu.pipeline_mode<synchronous>, transform_indices = @transform_3, window_bounds = array<i64: 128, 256>}, {pipeline_mode = #tpu.pipeline_mode<synchronous>, transform_indices = @transform_4, window_bounds = array<i64: 128, 128>}, {pipeline_mode = #tpu.pipeline_mode<synchronous>, transform_indices = @transform_5, window_bounds = array<i64: 128, 128>}, {pipeline_mode = #tpu.pipeline_mode<synchronous>, transform_indices = @transform_6, window_bounds = array<i64: 1, 128>}, {pipeline_mode = #tpu.pipeline_mode<synchronous>, transform_indices = @transform_7, window_bounds = array<i64: 1, 128>}, {pipeline_mode = #tpu.pipeline_mode<synchronous>, transform_indices = @transform_8, window_bounds = array<i64: 1, 128>}, {pipeline_mode = #tpu.pipeline_mode<synchronous>, transform_indices = @transform_9, window_bounds = array<i64: 1, 128>}, {pipeline_mode = #tpu.pipeline_mode<synchronous>, transform_indices = @transform_10, window_bounds = array<i64: 1, 128>}, {transform_indices = @transform_11, window_bounds = array<i64: 16, 128>}, {transform_indices = @transform_12, window_bounds = array<i64: 1, 16>}, {transform_indices = @transform_13, window_bounds = array<i64: 1, 1, 128>}]} {
    %c0 = arith.constant 0 : index
    %c0_0 = arith.constant 0 : index
    %0 = vector.load %arg1[%c0, %c0_0] : memref<16x128xf32, #tpu.memory_space<vmem>>, vector<16x128xf32>
    %1 = arith.truncf %0 : vector<16x128xf32> to vector<16x128xbf16>
    %c0_1 = arith.constant 0 : index
    %c0_2 = arith.constant 0 : index
    %2 = vector.load %arg4[%c0_1, %c0_2] : memref<128x256xbf16, #tpu.memory_space<vmem>>, vector<128x256xbf16>
    %cst = arith.constant dense<0.000000e+00> : vector<16x256xf32>
    %3 = tpu.matmul %1, %2, %cst {dimension_numbers = #tpu.dot_dimension_numbers<[1], [0], [0], [1], [0, 0, 1, 1], [], []>} : vector<16x128xbf16>, vector<128x256xbf16>, vector<16x256xf32> -> vector<16x256xf32>
    %4 = vector.extract_strided_slice %3 {offsets = [0, 0], sizes = [16, 128], strides = [1, 1]} : vector<16x256xf32> to vector<16x128xf32>
    %5 = arith.truncf %4 : vector<16x128xf32> to vector<16x128xbf16>
    %6 = vector.extract_strided_slice %3 {offsets = [0, 128], sizes = [16, 128], strides = [1, 1]} : vector<16x256xf32> to vector<16x128xf32>
    %c0_3 = arith.constant 0 : index
    %c0_4 = arith.constant 0 : index
    %7 = vector.load %arg2[%c0_3, %c0_4] : memref<128x128xbf16, #tpu.memory_space<vmem>>, vector<128x128xbf16>
    %cst_5 = arith.constant dense<0.000000e+00> : vector<16x128xf32>
    %8 = tpu.matmul %5, %7, %cst_5 {dimension_numbers = #tpu.dot_dimension_numbers<[1], [0], [0], [1], [0, 0, 1, 1], [], []>} : vector<16x128xbf16>, vector<128x128xbf16>, vector<16x128xf32> -> vector<16x128xf32>
    %c0_6 = arith.constant 0 : index
    %c0_7 = arith.constant 0 : index
    %9 = vector.load %arg11[%c0_6, %c0_7] : memref<1x128xf32, #tpu.memory_space<vmem>>, vector<1x128xf32>
    %10 = vector.broadcast %9 : vector<1x128xf32> to vector<16x128xf32>
    %11 = arith.addf %8, %10 : vector<16x128xf32>
    %cst_8 = arith.constant dense<0xFF800000> : vector<16xf32>
    %12 = vector.multi_reduction <maximumf>, %11, %cst_8 [1] : vector<16x128xf32> to vector<16xf32>
    %13 = vector.shape_cast %12 : vector<16xf32> to vector<16x1xf32>
    %14 = vector.broadcast %13 : vector<16x1xf32> to vector<16x128xf32>
    %15 = arith.subf %11, %14 : vector<16x128xf32>
    %16 = math.exp %15 : vector<16x128xf32>
    %cst_9 = arith.constant dense<0.000000e+00> : vector<16xf32>
    %17 = vector.multi_reduction <add>, %16, %cst_9 [1] : vector<16x128xf32> to vector<16xf32>
    %18 = vector.shape_cast %17 : vector<16xf32> to vector<16x1xf32>
    %19 = tpu.reciprocal %18 {approx = true} : vector<16x1xf32> -> vector<16x1xf32>
    %20 = arith.mulf %18, %19 : vector<16x1xf32>
    %cst_10 = arith.constant 2.000000e+00 : f32
    %21 = vector.broadcast %cst_10 : f32 to vector<16x1xf32>
    %22 = arith.subf %21, %20 : vector<16x1xf32>
    %23 = arith.mulf %19, %22 : vector<16x1xf32>
    %24 = vector.broadcast %23 : vector<16x1xf32> to vector<16x128xf32>
    %25 = arith.mulf %16, %24 : vector<16x128xf32>
    %26 = vector.broadcast %23 : vector<16x1xf32> to vector<16x128xf32>
    %27 = arith.cmpf oge, %25, %26 : vector<16x128xf32>
    %cst_11 = arith.constant -1.000000e+00 : f32
    %28 = vector.broadcast %cst_11 : f32 to vector<16x128xf32>
    %29 = arith.select %27, %28, %25 : vector<16x128xi1>, vector<16x128xf32>
    %cst_12 = arith.constant dense<0xFF800000> : vector<16xf32>
    %30 = vector.multi_reduction <maximumf>, %29, %cst_12 [1] : vector<16x128xf32> to vector<16xf32>
    %31 = vector.shape_cast %30 : vector<16xf32> to vector<16x1xf32>
    %32 = vector.broadcast %31 : vector<16x1xf32> to vector<16x128xf32>
    %33 = arith.cmpf oge, %29, %32 : vector<16x128xf32>
    %cst_13 = arith.constant -1.000000e+00 : f32
    %34 = vector.broadcast %cst_13 : f32 to vector<16x128xf32>
    %35 = arith.select %33, %34, %29 : vector<16x128xi1>, vector<16x128xf32>
    %cst_14 = arith.constant dense<0xFF800000> : vector<16xf32>
    %36 = vector.multi_reduction <maximumf>, %35, %cst_14 [1] : vector<16x128xf32> to vector<16xf32>
    %37 = vector.shape_cast %36 : vector<16xf32> to vector<16x1xf32>
    %38 = vector.broadcast %37 : vector<16x1xf32> to vector<16x128xf32>
    %39 = arith.cmpf oge, %35, %38 : vector<16x128xf32>
    %cst_15 = arith.constant -1.000000e+00 : f32
    %40 = vector.broadcast %cst_15 : f32 to vector<16x128xf32>
    %41 = arith.select %39, %40, %35 : vector<16x128xi1>, vector<16x128xf32>
    %cst_16 = arith.constant dense<0xFF800000> : vector<16xf32>
    %42 = vector.multi_reduction <maximumf>, %41, %cst_16 [1] : vector<16x128xf32> to vector<16xf32>
    %43 = vector.shape_cast %42 : vector<16xf32> to vector<16x1xf32>
    %44 = vector.broadcast %43 : vector<16x1xf32> to vector<16x128xf32>
    %45 = arith.cmpf oge, %41, %44 : vector<16x128xf32>
    %cst_17 = arith.constant -1.000000e+00 : f32
    %46 = vector.broadcast %cst_17 : f32 to vector<16x128xf32>
    %47 = arith.select %45, %46, %41 : vector<16x128xi1>, vector<16x128xf32>
    %cst_18 = arith.constant dense<0xFF800000> : vector<16xf32>
    %48 = vector.multi_reduction <maximumf>, %47, %cst_18 [1] : vector<16x128xf32> to vector<16xf32>
    %49 = vector.shape_cast %48 : vector<16xf32> to vector<16x1xf32>
    %50 = vector.broadcast %49 : vector<16x1xf32> to vector<16x128xf32>
    %51 = arith.cmpf oge, %25, %50 : vector<16x128xf32>
    %cst_19 = arith.constant 0.000000e+00 : f32
    %52 = vector.broadcast %cst_19 : f32 to vector<16x128xf32>
    %53 = arith.select %51, %25, %52 : vector<16x128xi1>, vector<16x128xf32>
    %54 = arith.truncf %53 : vector<16x128xf32> to vector<16x128xbf16>
    %c0_20 = arith.constant 0 : index
    %c0_21 = arith.constant 0 : index
    %55 = vector.load %arg3[%c0_20, %c0_21] : memref<128x128xbf16, #tpu.memory_space<vmem>>, vector<128x128xbf16>
    %cst_22 = arith.constant dense<0.000000e+00> : vector<16x128xf32>
    %56 = tpu.matmul %54, %55, %cst_22 {dimension_numbers = #tpu.dot_dimension_numbers<[1], [0], [0], [1], [0, 0, 1, 1], [], []>} : vector<16x128xbf16>, vector<128x128xbf16>, vector<16x128xf32> -> vector<16x128xf32>
    %57 = arith.truncf %56 : vector<16x128xf32> to vector<16x128xbf16>
    %c0_23 = arith.constant 0 : index
    %c0_24 = arith.constant 0 : index
    %58 = vector.load %arg5[%c0_23, %c0_24] : memref<128x128xbf16, #tpu.memory_space<vmem>>, vector<128x128xbf16>
    %cst_25 = arith.constant dense<0.000000e+00> : vector<16x128xf32>
    %59 = tpu.matmul %57, %58, %cst_25 {dimension_numbers = #tpu.dot_dimension_numbers<[1], [0], [0], [1], [0, 0, 1, 1], [], []>} : vector<16x128xbf16>, vector<128x128xbf16>, vector<16x128xf32> -> vector<16x128xf32>
    %60 = arith.addf %6, %59 : vector<16x128xf32>
    %c0_26 = arith.constant 0 : index
    %c0_27 = arith.constant 0 : index
    %61 = vector.load %arg7[%c0_26, %c0_27] : memref<1x128xf32, #tpu.memory_space<vmem>>, vector<1x128xf32>
    %62 = vector.broadcast %61 : vector<1x128xf32> to vector<16x128xf32>
    %63 = arith.addf %60, %62 : vector<16x128xf32>
    %64 = arith.negf %63 : vector<16x128xf32>
    %65 = math.exp %64 : vector<16x128xf32>
    %cst_28 = arith.constant 1.000000e+00 : f32
    %66 = vector.broadcast %cst_28 : f32 to vector<16x128xf32>
    %67 = arith.addf %66, %65 : vector<16x128xf32>
    %68 = arith.divf %66, %67 : vector<16x128xf32>
    %69 = arith.mulf %68, %56 : vector<16x128xf32>
    %cst_29 = arith.constant 1.000000e+00 : f32
    %70 = vector.broadcast %cst_29 : f32 to vector<16x128xf32>
    %71 = arith.subf %70, %68 : vector<16x128xf32>
    %72 = arith.mulf %71, %0 : vector<16x128xf32>
    %73 = arith.addf %69, %72 : vector<16x128xf32>
    %74 = arith.truncf %73 : vector<16x128xf32> to vector<16x128xbf16>
    %c0_30 = arith.constant 0 : index
    %c0_31 = arith.constant 0 : index
    %75 = vector.load %arg6[%c0_30, %c0_31] : memref<128x128xbf16, #tpu.memory_space<vmem>>, vector<128x128xbf16>
    %cst_32 = arith.constant dense<0.000000e+00> : vector<16x128xf32>
    %76 = tpu.matmul %74, %75, %cst_32 {dimension_numbers = #tpu.dot_dimension_numbers<[1], [0], [0], [1], [0, 0, 1, 1], [], []>} : vector<16x128xbf16>, vector<128x128xbf16>, vector<16x128xf32> -> vector<16x128xf32>
    %c0_33 = arith.constant 0 : index
    %c0_34 = arith.constant 0 : index
    %77 = vector.load %arg8[%c0_33, %c0_34] : memref<1x128xf32, #tpu.memory_space<vmem>>, vector<1x128xf32>
    %78 = vector.broadcast %77 : vector<1x128xf32> to vector<16x128xf32>
    %79 = arith.addf %76, %78 : vector<16x128xf32>
    %cst_35 = arith.constant dense<0.000000e+00> : vector<16xf32>
    %80 = vector.multi_reduction <add>, %79, %cst_35 [1] : vector<16x128xf32> to vector<16xf32>
    %81 = vector.shape_cast %80 : vector<16xf32> to vector<16x1xf32>
    %cst_36 = arith.constant 1.280000e+02 : f32
    %82 = vector.broadcast %cst_36 : f32 to vector<16x1xf32>
    %83 = arith.divf %81, %82 : vector<16x1xf32>
    %84 = arith.mulf %79, %79 : vector<16x128xf32>
    %cst_37 = arith.constant dense<0.000000e+00> : vector<16xf32>
    %85 = vector.multi_reduction <add>, %84, %cst_37 [1] : vector<16x128xf32> to vector<16xf32>
    %86 = vector.shape_cast %85 : vector<16xf32> to vector<16x1xf32>
    %cst_38 = arith.constant 1.280000e+02 : f32
    %87 = vector.broadcast %cst_38 : f32 to vector<16x1xf32>
    %88 = arith.divf %86, %87 : vector<16x1xf32>
    %89 = arith.mulf %83, %83 : vector<16x1xf32>
    %90 = arith.subf %88, %89 : vector<16x1xf32>
    %91 = vector.broadcast %83 : vector<16x1xf32> to vector<16x128xf32>
    %92 = arith.subf %79, %91 : vector<16x128xf32>
    %cst_39 = arith.constant 9.99999974E-6 : f32
    %93 = vector.broadcast %cst_39 : f32 to vector<16x1xf32>
    %94 = arith.addf %90, %93 : vector<16x1xf32>
    %95 = math.rsqrt %94 : vector<16x1xf32>
    %96 = vector.broadcast %95 : vector<16x1xf32> to vector<16x128xf32>
    %97 = arith.mulf %92, %96 : vector<16x128xf32>
    %c0_40 = arith.constant 0 : index
    %c0_41 = arith.constant 0 : index
    %98 = vector.load %arg9[%c0_40, %c0_41] : memref<1x128xf32, #tpu.memory_space<vmem>>, vector<1x128xf32>
    %99 = vector.broadcast %98 : vector<1x128xf32> to vector<16x128xf32>
    %100 = arith.mulf %97, %99 : vector<16x128xf32>
    %c0_42 = arith.constant 0 : index
    %c0_43 = arith.constant 0 : index
    %101 = vector.load %arg10[%c0_42, %c0_43] : memref<1x128xf32, #tpu.memory_space<vmem>>, vector<1x128xf32>
    %102 = vector.broadcast %101 : vector<1x128xf32> to vector<16x128xf32>
    %103 = arith.addf %100, %102 : vector<16x128xf32>
    %104 = arith.addf %103, %0 : vector<16x128xf32>
    %c0_44 = arith.constant 0 : index
    %c0_45 = arith.constant 0 : index
    %105 = vector.load %arg12[%c0_44, %c0_45] : memref<16x128xf32, #tpu.memory_space<vmem>>, vector<16x128xf32>
    tpu.vector_store %arg12[%c0_44, %c0_45], %104 {strides = array<i32>} : memref<16x128xf32, #tpu.memory_space<vmem>>, vector<16x128xf32>,
    %106 = tpu.transpose %23, [1, 0] : vector<16x1xf32> -> vector<1x16xf32>
    %c0_46 = arith.constant 0 : index
    %c0_47 = arith.constant 0 : index
    %107 = vector.load %arg13[%c0_46, %c0_47] : memref<1x16xf32, #tpu.memory_space<vmem>>, vector<1x16xf32>
    tpu.vector_store %arg13[%c0_46, %c0_47], %106 {strides = array<i32>} : memref<1x16xf32, #tpu.memory_space<vmem>>, vector<1x16xf32>,
    %cst_48 = arith.constant dense<0.000000e+00> : vector<128xf32>
    %108 = vector.multi_reduction <add>, %53, %cst_48 [0] : vector<16x128xf32> to vector<128xf32>
    %109 = vector.shape_cast %108 : vector<128xf32> to vector<1x128xf32>
    %110 = vector.shape_cast %109 : vector<1x128xf32> to vector<1x1x128xf32>
    %c0_49 = arith.constant 0 : index
    %c0_50 = arith.constant 0 : index
    %c0_51 = arith.constant 0 : index
    %111 = vector.load %arg14[%c0_49, %c0_50, %c0_51] : memref<1x1x128xf32, #tpu.memory_space<vmem>>, vector<1x1x128xf32>
    tpu.vector_store %arg14[%c0_49, %c0_50, %c0_51], %110 {strides = array<i32>} : memref<1x1x128xf32, #tpu.memory_space<vmem>>, vector<1x1x128xf32>,
    return
  }
  func.func @transform_0(%arg0: i32) -> (i32, i32) {
    %c0_i32 = arith.constant 0 : i32
    %c0_i32_0 = arith.constant 0 : i32
    return %arg0, %c0_i32 : i32, i32
  }
  func.func @transform_1(%arg0: i32) -> (i32, i32) {
    %c0_i32 = arith.constant 0 : i32
    %c0_i32_0 = arith.constant 0 : i32
    %c0_i32_1 = arith.constant 0 : i32
    return %c0_i32, %c0_i32_0 : i32, i32
  }
  func.func @transform_2(%arg0: i32) -> (i32, i32) {
    %c0_i32 = arith.constant 0 : i32
    %c0_i32_0 = arith.constant 0 : i32
    %c0_i32_1 = arith.constant 0 : i32
    return %c0_i32, %c0_i32_0 : i32, i32
  }
  func.func @transform_3(%arg0: i32) -> (i32, i32) {
    %c0_i32 = arith.constant 0 : i32
    %c0_i32_0 = arith.constant 0 : i32
    %c0_i32_1 = arith.constant 0 : i32
    return %c0_i32, %c0_i32_0 : i32, i32
  }
  func.func @transform_4(%arg0: i32) -> (i32, i32) {
    %c0_i32 = arith.constant 0 : i32
    %c0_i32_0 = arith.constant 0 : i32
    %c0_i32_1 = arith.constant 0 : i32
    return %c0_i32, %c0_i32_0 : i32, i32
  }
  func.func @transform_5(%arg0: i32) -> (i32, i32) {
    %c0_i32 = arith.constant 0 : i32
    %c0_i32_0 = arith.constant 0 : i32
    %c0_i32_1 = arith.constant 0 : i32
    return %c0_i32, %c0_i32_0 : i32, i32
  }
  func.func @transform_6(%arg0: i32) -> (i32, i32) {
    %c0_i32 = arith.constant 0 : i32
    %c0_i32_0 = arith.constant 0 : i32
    %c0_i32_1 = arith.constant 0 : i32
    return %c0_i32, %c0_i32_0 : i32, i32
  }
  func.func @transform_7(%arg0: i32) -> (i32, i32) {
    %c0_i32 = arith.constant 0 : i32
    %c0_i32_0 = arith.constant 0 : i32
    %c0_i32_1 = arith.constant 0 : i32
    return %c0_i32, %c0_i32_0 : i32, i32
  }
  func.func @transform_8(%arg0: i32) -> (i32, i32) {
    %c0_i32 = arith.constant 0 : i32
    %c0_i32_0 = arith.constant 0 : i32
    %c0_i32_1 = arith.constant 0 : i32
    return %c0_i32, %c0_i32_0 : i32, i32
  }
  func.func @transform_9(%arg0: i32) -> (i32, i32) {
    %c0_i32 = arith.constant 0 : i32
    %c0_i32_0 = arith.constant 0 : i32
    %c0_i32_1 = arith.constant 0 : i32
    return %c0_i32, %c0_i32_0 : i32, i32
  }
  func.func @transform_10(%arg0: i32) -> (i32, i32) {
    %c0_i32 = arith.constant 0 : i32
    %c0_i32_0 = arith.constant 0 : i32
    %c0_i32_1 = arith.constant 0 : i32
    return %c0_i32, %c0_i32_0 : i32, i32
  }
  func.func @transform_11(%arg0: i32) -> (i32, i32) {
    %c0_i32 = arith.constant 0 : i32
    %c0_i32_0 = arith.constant 0 : i32
    return %arg0, %c0_i32 : i32, i32
  }
  func.func @transform_12(%arg0: i32) -> (i32, i32) {
    %c0_i32 = arith.constant 0 : i32
    %c0_i32_0 = arith.constant 0 : i32
    return %c0_i32, %arg0 : i32, i32
  }
  func.func @transform_13(%arg0: i32) -> (i32, i32, i32) {
    %c0_i32 = arith.constant 0 : i32
    %c0_i32_0 = arith.constant 0 : i32
    %c0_i32_1 = arith.constant 0 : i32
    return %arg0, %c0_i32, %c0_i32_0 : i32, i32, i32
  }
}

module attributes {stable_mosaic.version = 11 : i64} {
  func.func @_kg_capsule_kernel(%arg0: i32, %arg1: memref<16x128xf32, #tpu.memory_space<vmem>>, %arg2: memref<128x128xbf16, #tpu.memory_space<vmem>>, %arg3: memref<128x128xbf16, #tpu.memory_space<vmem>>, %arg4: memref<128x256xbf16, #tpu.memory_space<vmem>>, %arg5: memref<128x128xbf16, #tpu.memory_space<vmem>>, %arg6: memref<128x128xbf16, #tpu.memory_space<vmem>>, %arg7: memref<1x128xf32, #tpu.memory_space<vmem>>, %arg8: memref<1x128xf32, #tpu.memory_space<vmem>>, %arg9: memref<1x128xf32, #tpu.memory_space<vmem>>, %arg10: memref<1x128xf32, #tpu.memory_space<vmem>>, %arg11: memref<1x128xf32, #tpu.memory_space<vmem>>, %arg12: memref<16x128xf32, #tpu.memory_space<vmem>>, %arg13: memref<1x16xf32, #tpu.memory_space<vmem>>, %arg14: memref<1x1x128xf32, #tpu.memory_space<vmem>>) attributes {dimension_semantics = [#tpu.dimension_semantics<parallel>], iteration_bounds = array<i64: 1>, scalar_prefetch = 0 : i64, scratch_operands = 0 : i64, tpu.core_type = #tpu.core_type<tc>, window_params = [{transform_indices = @transform_0, window_bounds = array<i64: 16, 128>}, {pipeline_mode = #tpu.pipeline_mode<synchronous>, transform_indices = @transform_1, window_bounds = array<i64: 128, 128>}, {pipeline_mode = #tpu.pipeline_mode<synchronous>, transform_indices = @transform_2, window_bounds = array<i64: 128, 128>}, {pipeline_mode = #tpu.pipeline_mode<synchronous>, transform_indices = @transform_3, window_bounds = array<i64: 128, 256>}, {pipeline_mode = #tpu.pipeline_mode<synchronous>, transform_indices = @transform_4, window_bounds = array<i64: 128, 128>}, {pipeline_mode = #tpu.pipeline_mode<synchronous>, transform_indices = @transform_5, window_bounds = array<i64: 128, 128>}, {pipeline_mode = #tpu.pipeline_mode<synchronous>, transform_indices = @transform_6, window_bounds = array<i64: 1, 128>}, {pipeline_mode = #tpu.pipeline_mode<synchronous>, transform_indices = @transform_7, window_bounds = array<i64: 1, 128>}, {pipeline_mode = #tpu.pipeline_mode<synchronous>, transform_indices = @transform_8, window_bounds = array<i64: 1, 128>}, {pipeline_mode = #tpu.pipeline_mode<synchronous>, transform_indices = @transform_9, window_bounds = array<i64: 1, 128>}, {pipeline_mode = #tpu.pipeline_mode<synchronous>, transform_indices = @transform_10, window_bounds = array<i64: 1, 128>}, {transform_indices = @transform_11, window_bounds = array<i64: 16, 128>}, {transform_indices = @transform_12, window_bounds = array<i64: 1, 16>}, {transform_indices = @transform_13, window_bounds = array<i64: 1, 1, 128>}]} {
    %c0 = arith.constant 0 : index
    %c0_0 = arith.constant 0 : index
    %0 = vector.load %arg1[%c0, %c0_0] : memref<16x128xf32, #tpu.memory_space<vmem>>, vector<16x128xf32>
    %1 = arith.truncf %0 : vector<16x128xf32> to vector<16x128xbf16>
    %c0_1 = arith.constant 0 : index
    %c0_2 = arith.constant 0 : index
    %2 = vector.load %arg4[%c0_1, %c0_2] : memref<128x256xbf16, #tpu.memory_space<vmem>>, vector<128x256xbf16>
    %cst = arith.constant dense<0.000000e+00> : vector<16x256xf32>
    %3 = tpu.matmul %1, %2, %cst {dimension_numbers = #tpu.dot_dimension_numbers<[1], [0], [0], [1], [0, 0, 1, 1], [], []>} : vector<16x128xbf16>, vector<128x256xbf16>, vector<16x256xf32> -> vector<16x256xf32>
    %4 = vector.extract_strided_slice %3 {offsets = [0, 0], sizes = [16, 128], strides = [1, 1]} : vector<16x256xf32> to vector<16x128xf32>
    %5 = arith.truncf %4 : vector<16x128xf32> to vector<16x128xbf16>
    %6 = vector.extract_strided_slice %3 {offsets = [0, 128], sizes = [16, 128], strides = [1, 1]} : vector<16x256xf32> to vector<16x128xf32>
    %c0_3 = arith.constant 0 : index
    %c0_4 = arith.constant 0 : index
    %7 = vector.load %arg2[%c0_3, %c0_4] : memref<128x128xbf16, #tpu.memory_space<vmem>>, vector<128x128xbf16>
    %cst_5 = arith.constant dense<0.000000e+00> : vector<16x128xf32>
    %8 = tpu.matmul %5, %7, %cst_5 {dimension_numbers = #tpu.dot_dimension_numbers<[1], [0], [0], [1], [0, 0, 1, 1], [], []>} : vector<16x128xbf16>, vector<128x128xbf16>, vector<16x128xf32> -> vector<16x128xf32>
    %c0_6 = arith.constant 0 : index
    %c0_7 = arith.constant 0 : index
    %9 = vector.load %arg11[%c0_6, %c0_7] : memref<1x128xf32, #tpu.memory_space<vmem>>, vector<1x128xf32>
    %10 = vector.broadcast %9 : vector<1x128xf32> to vector<16x128xf32>
    %11 = arith.addf %8, %10 : vector<16x128xf32>
    %cst_8 = arith.constant dense<0xFF800000> : vector<16xf32>
    %12 = vector.multi_reduction <maximumf>, %11, %cst_8 [1] : vector<16x128xf32> to vector<16xf32>
    %13 = vector.shape_cast %12 : vector<16xf32> to vector<16x1xf32>
    %14 = vector.broadcast %13 : vector<16x1xf32> to vector<16x128xf32>
    %15 = arith.subf %11, %14 : vector<16x128xf32>
    %16 = math.exp %15 : vector<16x128xf32>
    %cst_9 = arith.constant dense<0.000000e+00> : vector<16xf32>
    %17 = vector.multi_reduction <add>, %16, %cst_9 [1] : vector<16x128xf32> to vector<16xf32>
    %18 = vector.shape_cast %17 : vector<16xf32> to vector<16x1xf32>
    %19 = tpu.reciprocal %18 {approx = true} : vector<16x1xf32> -> vector<16x1xf32>
    %20 = arith.mulf %18, %19 : vector<16x1xf32>
    %cst_10 = arith.constant 2.000000e+00 : f32
    %21 = vector.broadcast %cst_10 : f32 to vector<16x1xf32>
    %22 = arith.subf %21, %20 : vector<16x1xf32>
    %23 = arith.mulf %19, %22 : vector<16x1xf32>
    %24 = vector.broadcast %23 : vector<16x1xf32> to vector<16x128xf32>
    %25 = arith.mulf %16, %24 : vector<16x128xf32>
    %26 = vector.broadcast %23 : vector<16x1xf32> to vector<16x128xf32>
    %27 = arith.cmpf oge, %25, %26 : vector<16x128xf32>
    %cst_11 = arith.constant -1.000000e+00 : f32
    %28 = vector.broadcast %cst_11 : f32 to vector<16x128xf32>
    %29 = arith.select %27, %28, %25 : vector<16x128xi1>, vector<16x128xf32>
    %cst_12 = arith.constant dense<0xFF800000> : vector<16xf32>
    %30 = vector.multi_reduction <maximumf>, %29, %cst_12 [1] : vector<16x128xf32> to vector<16xf32>
    %31 = vector.shape_cast %30 : vector<16xf32> to vector<16x1xf32>
    %32 = vector.broadcast %31 : vector<16x1xf32> to vector<16x128xf32>
    %33 = arith.cmpf oge, %29, %32 : vector<16x128xf32>
    %cst_13 = arith.constant -1.000000e+00 : f32
    %34 = vector.broadcast %cst_13 : f32 to vector<16x128xf32>
    %35 = arith.select %33, %34, %29 : vector<16x128xi1>, vector<16x128xf32>
    %cst_14 = arith.constant dense<0xFF800000> : vector<16xf32>
    %36 = vector.multi_reduction <maximumf>, %35, %cst_14 [1] : vector<16x128xf32> to vector<16xf32>
    %37 = vector.shape_cast %36 : vector<16xf32> to vector<16x1xf32>
    %38 = vector.broadcast %37 : vector<16x1xf32> to vector<16x128xf32>
    %39 = arith.cmpf oge, %35, %38 : vector<16x128xf32>
    %cst_15 = arith.constant -1.000000e+00 : f32
    %40 = vector.broadcast %cst_15 : f32 to vector<16x128xf32>
    %41 = arith.select %39, %40, %35 : vector<16x128xi1>, vector<16x128xf32>
    %cst_16 = arith.constant dense<0xFF800000> : vector<16xf32>
    %42 = vector.multi_reduction <maximumf>, %41, %cst_16 [1] : vector<16x128xf32> to vector<16xf32>
    %43 = vector.shape_cast %42 : vector<16xf32> to vector<16x1xf32>
    %44 = vector.broadcast %43 : vector<16x1xf32> to vector<16x128xf32>
    %45 = arith.cmpf oge, %41, %44 : vector<16x128xf32>
    %cst_17 = arith.constant -1.000000e+00 : f32
    %46 = vector.broadcast %cst_17 : f32 to vector<16x128xf32>
    %47 = arith.select %45, %46, %41 : vector<16x128xi1>, vector<16x128xf32>
    %cst_18 = arith.constant dense<0xFF800000> : vector<16xf32>
    %48 = vector.multi_reduction <maximumf>, %47, %cst_18 [1] : vector<16x128xf32> to vector<16xf32>
    %49 = vector.shape_cast %48 : vector<16xf32> to vector<16x1xf32>
    %50 = vector.broadcast %49 : vector<16x1xf32> to vector<16x128xf32>
    %51 = arith.cmpf oge, %25, %50 : vector<16x128xf32>
    %cst_19 = arith.constant 0.000000e+00 : f32
    %52 = vector.broadcast %cst_19 : f32 to vector<16x128xf32>
    %53 = arith.select %51, %25, %52 : vector<16x128xi1>, vector<16x128xf32>
    %54 = arith.truncf %53 : vector<16x128xf32> to vector<16x128xbf16>
    %c0_20 = arith.constant 0 : index
    %c0_21 = arith.constant 0 : index
    %55 = vector.load %arg3[%c0_20, %c0_21] : memref<128x128xbf16, #tpu.memory_space<vmem>>, vector<128x128xbf16>
    %cst_22 = arith.constant dense<0.000000e+00> : vector<16x128xf32>
    %56 = tpu.matmul %54, %55, %cst_22 {dimension_numbers = #tpu.dot_dimension_numbers<[1], [0], [0], [1], [0, 0, 1, 1], [], []>} : vector<16x128xbf16>, vector<128x128xbf16>, vector<16x128xf32> -> vector<16x128xf32>
    %57 = arith.truncf %56 : vector<16x128xf32> to vector<16x128xbf16>
    %c0_23 = arith.constant 0 : index
    %c0_24 = arith.constant 0 : index
    %58 = vector.load %arg5[%c0_23, %c0_24] : memref<128x128xbf16, #tpu.memory_space<vmem>>, vector<128x128xbf16>
    %cst_25 = arith.constant dense<0.000000e+00> : vector<16x128xf32>
    %59 = tpu.matmul %57, %58, %cst_25 {dimension_numbers = #tpu.dot_dimension_numbers<[1], [0], [0], [1], [0, 0, 1, 1], [], []>} : vector<16x128xbf16>, vector<128x128xbf16>, vector<16x128xf32> -> vector<16x128xf32>
    %60 = arith.addf %6, %59 : vector<16x128xf32>
    %c0_26 = arith.constant 0 : index
    %c0_27 = arith.constant 0 : index
    %61 = vector.load %arg7[%c0_26, %c0_27] : memref<1x128xf32, #tpu.memory_space<vmem>>, vector<1x128xf32>
    %62 = vector.broadcast %61 : vector<1x128xf32> to vector<16x128xf32>
    %63 = arith.addf %60, %62 : vector<16x128xf32>
    %64 = arith.negf %63 : vector<16x128xf32>
    %65 = math.exp %64 : vector<16x128xf32>
    %cst_28 = arith.constant 1.000000e+00 : f32
    %66 = vector.broadcast %cst_28 : f32 to vector<16x128xf32>
    %67 = arith.addf %66, %65 : vector<16x128xf32>
    %68 = arith.divf %66, %67 : vector<16x128xf32>
    %69 = arith.mulf %68, %56 : vector<16x128xf32>
    %cst_29 = arith.constant 1.000000e+00 : f32
    %70 = vector.broadcast %cst_29 : f32 to vector<16x128xf32>
    %71 = arith.subf %70, %68 : vector<16x128xf32>
    %72 = arith.mulf %71, %0 : vector<16x128xf32>
    %73 = arith.addf %69, %72 : vector<16x128xf32>
    %74 = arith.truncf %73 : vector<16x128xf32> to vector<16x128xbf16>
    %c0_30 = arith.constant 0 : index
    %c0_31 = arith.constant 0 : index
    %75 = vector.load %arg6[%c0_30, %c0_31] : memref<128x128xbf16, #tpu.memory_space<vmem>>, vector<128x128xbf16>
    %cst_32 = arith.constant dense<0.000000e+00> : vector<16x128xf32>
    %76 = tpu.matmul %74, %75, %cst_32 {dimension_numbers = #tpu.dot_dimension_numbers<[1], [0], [0], [1], [0, 0, 1, 1], [], []>} : vector<16x128xbf16>, vector<128x128xbf16>, vector<16x128xf32> -> vector<16x128xf32>
    %c0_33 = arith.constant 0 : index
    %c0_34 = arith.constant 0 : index
    %77 = vector.load %arg8[%c0_33, %c0_34] : memref<1x128xf32, #tpu.memory_space<vmem>>, vector<1x128xf32>
    %78 = vector.broadcast %77 : vector<1x128xf32> to vector<16x128xf32>
    %79 = arith.addf %76, %78 : vector<16x128xf32>
    %cst_35 = arith.constant dense<0.000000e+00> : vector<16xf32>
    %80 = vector.multi_reduction <add>, %79, %cst_35 [1] : vector<16x128xf32> to vector<16xf32>
    %81 = vector.shape_cast %80 : vector<16xf32> to vector<16x1xf32>
    %cst_36 = arith.constant 1.280000e+02 : f32
    %82 = vector.broadcast %cst_36 : f32 to vector<16x1xf32>
    %83 = arith.divf %81, %82 : vector<16x1xf32>
    %84 = arith.mulf %79, %79 : vector<16x128xf32>
    %cst_37 = arith.constant dense<0.000000e+00> : vector<16xf32>
    %85 = vector.multi_reduction <add>, %84, %cst_37 [1] : vector<16x128xf32> to vector<16xf32>
    %86 = vector.shape_cast %85 : vector<16xf32> to vector<16x1xf32>
    %cst_38 = arith.constant 1.280000e+02 : f32
    %87 = vector.broadcast %cst_38 : f32 to vector<16x1xf32>
    %88 = arith.divf %86, %87 : vector<16x1xf32>
    %89 = arith.mulf %83, %83 : vector<16x1xf32>
    %90 = arith.subf %88, %89 : vector<16x1xf32>
    %91 = vector.broadcast %83 : vector<16x1xf32> to vector<16x128xf32>
    %92 = arith.subf %79, %91 : vector<16x128xf32>
    %cst_39 = arith.constant 9.99999974E-6 : f32
    %93 = vector.broadcast %cst_39 : f32 to vector<16x1xf32>
    %94 = arith.addf %90, %93 : vector<16x1xf32>
    %95 = math.rsqrt %94 : vector<16x1xf32>
    %96 = vector.broadcast %95 : vector<16x1xf32> to vector<16x128xf32>
    %97 = arith.mulf %92, %96 : vector<16x128xf32>
    %c0_40 = arith.constant 0 : index
    %c0_41 = arith.constant 0 : index
    %98 = vector.load %arg9[%c0_40, %c0_41] : memref<1x128xf32, #tpu.memory_space<vmem>>, vector<1x128xf32>
    %99 = vector.broadcast %98 : vector<1x128xf32> to vector<16x128xf32>
    %100 = arith.mulf %97, %99 : vector<16x128xf32>
    %c0_42 = arith.constant 0 : index
    %c0_43 = arith.constant 0 : index
    %101 = vector.load %arg10[%c0_42, %c0_43] : memref<1x128xf32, #tpu.memory_space<vmem>>, vector<1x128xf32>
    %102 = vector.broadcast %101 : vector<1x128xf32> to vector<16x128xf32>
    %103 = arith.addf %100, %102 : vector<16x128xf32>
    %104 = arith.addf %103, %0 : vector<16x128xf32>
    %c0_44 = arith.constant 0 : index
    %c0_45 = arith.constant 0 : index
    %105 = vector.load %arg12[%c0_44, %c0_45] : memref<16x128xf32, #tpu.memory_space<vmem>>, vector<16x128xf32>
    tpu.vector_store %arg12[%c0_44, %c0_45], %104 {strides = array<i32>} : memref<16x128xf32, #tpu.memory_space<vmem>>, vector<16x128xf32>,
    %106 = tpu.transpose %23, [1, 0] : vector<16x1xf32> -> vector<1x16xf32>
    %c0_46 = arith.constant 0 : index
    %c0_47 = arith.constant 0 : index
    %107 = vector.load %arg13[%c0_46, %c0_47] : memref<1x16xf32, #tpu.memory_space<vmem>>, vector<1x16xf32>
    tpu.vector_store %arg13[%c0_46, %c0_47], %106 {strides = array<i32>} : memref<1x16xf32, #tpu.memory_space<vmem>>, vector<1x16xf32>,
    %cst_48 = arith.constant dense<0.000000e+00> : vector<128xf32>
    %108 = vector.multi_reduction <add>, %53, %cst_48 [0] : vector<16x128xf32> to vector<128xf32>
    %109 = vector.shape_cast %108 : vector<128xf32> to vector<1x128xf32>
    %110 = vector.shape_cast %109 : vector<1x128xf32> to vector<1x1x128xf32>
    %c0_49 = arith.constant 0 : index
    %c0_50 = arith.constant 0 : index
    %c0_51 = arith.constant 0 : index
    %111 = vector.load %arg14[%c0_49, %c0_50, %c0_51] : memref<1x1x128xf32, #tpu.memory_space<vmem>>, vector<1x1x128xf32>
    tpu.vector_store %arg14[%c0_49, %c0_50, %c0_51], %110 {strides = array<i32>} : memref<1x1x128xf32, #tpu.memory_space<vmem>>, vector<1x1x128xf32>,
    return
  }
  func.func @transform_0(%arg0: i32) -> (i32, i32) {
    %c0_i32 = arith.constant 0 : i32
    %c0_i32_0 = arith.constant 0 : i32
    return %arg0, %c0_i32 : i32, i32
  }
  func.func @transform_1(%arg0: i32) -> (i32, i32) {
    %c0_i32 = arith.constant 0 : i32
    %c0_i32_0 = arith.constant 0 : i32
    %c0_i32_1 = arith.constant 0 : i32
    return %c0_i32, %c0_i32_0 : i32, i32
  }
  func.func @transform_2(%arg0: i32) -> (i32, i32) {
    %c0_i32 = arith.constant 0 : i32
    %c0_i32_0 = arith.constant 0 : i32
    %c0_i32_1 = arith.constant 0 : i32
    return %c0_i32, %c0_i32_0 : i32, i32
  }
  func.func @transform_3(%arg0: i32) -> (i32, i32) {
    %c0_i32 = arith.constant 0 : i32
    %c0_i32_0 = arith.constant 0 : i32
    %c0_i32_1 = arith.constant 0 : i32
    return %c0_i32, %c0_i32_0 : i32, i32
  }
  func.func @transform_4(%arg0: i32) -> (i32, i32) {
    %c0_i32 = arith.constant 0 : i32
    %c0_i32_0 = arith.constant 0 : i32
    %c0_i32_1 = arith.constant 0 : i32
    return %c0_i32, %c0_i32_0 : i32, i32
  }
  func.func @transform_5(%arg0: i32) -> (i32, i32) {
    %c0_i32 = arith.constant 0 : i32
    %c0_i32_0 = arith.constant 0 : i32
    %c0_i32_1 = arith.constant 0 : i32
    return %c0_i32, %c0_i32_0 : i32, i32
  }
  func.func @transform_6(%arg0: i32) -> (i32, i32) {
    %c0_i32 = arith.constant 0 : i32
    %c0_i32_0 = arith.constant 0 : i32
    %c0_i32_1 = arith.constant 0 : i32
    return %c0_i32, %c0_i32_0 : i32, i32
  }
  func.func @transform_7(%arg0: i32) -> (i32, i32) {
    %c0_i32 = arith.constant 0 : i32
    %c0_i32_0 = arith.constant 0 : i32
    %c0_i32_1 = arith.constant 0 : i32
    return %c0_i32, %c0_i32_0 : i32, i32
  }
  func.func @transform_8(%arg0: i32) -> (i32, i32) {
    %c0_i32 = arith.constant 0 : i32
    %c0_i32_0 = arith.constant 0 : i32
    %c0_i32_1 = arith.constant 0 : i32
    return %c0_i32, %c0_i32_0 : i32, i32
  }
  func.func @transform_9(%arg0: i32) -> (i32, i32) {
    %c0_i32 = arith.constant 0 : i32
    %c0_i32_0 = arith.constant 0 : i32
    %c0_i32_1 = arith.constant 0 : i32
    return %c0_i32, %c0_i32_0 : i32, i32
  }
  func.func @transform_10(%arg0: i32) -> (i32, i32) {
    %c0_i32 = arith.constant 0 : i32
    %c0_i32_0 = arith.constant 0 : i32
    %c0_i32_1 = arith.constant 0 : i32
    return %c0_i32, %c0_i32_0 : i32, i32
  }
  func.func @transform_11(%arg0: i32) -> (i32, i32) {
    %c0_i32 = arith.constant 0 : i32
    %c0_i32_0 = arith.constant 0 : i32
    return %arg0, %c0_i32 : i32, i32
  }
  func.func @transform_12(%arg0: i32) -> (i32, i32) {
    %c0_i32 = arith.constant 0 : i32
    %c0_i32_0 = arith.constant 0 : i32
    return %c0_i32, %arg0 : i32, i32
  }
  func.func @transform_13(%arg0: i32) -> (i32, i32, i32) {
    %c0_i32 = arith.constant 0 : i32
    %c0_i32_0 = arith.constant 0 : i32
    %c0_i32_1 = arith.constant 0 : i32
    return %arg0, %c0_i32, %c0_i32_0 : i32, i32, i32
  }
}

</mosaic_0001>

<bundles_post_ra>
// kernel: tpu_custom_call.1
= control target key start
LH: loop header
LB: loop body
LE: loop exit
PB: predicated region body
PF: predicated region fallthrough
CT: control target
= control target key end

     0   :  { %19 = vsyncpa [#allocation3], 0  ;;  %s1729_s0 = inlined_call_operand.hbm [shape: f32[16,128], index: 0, kind: input, shape index: {}]   ;;  %s1730_s1 = inlined_call_operand.hbm [shape: bf16[128,128], index: 1, kind: input, shape index: {}]   ;;  %s1731_s2 = inlined_call_operand.hbm [shape: bf16[128,128], index: 2, kind: input, shape index: {}]   ;;  %s1732_s3 = inlined_call_operand.hbm [shape: bf16[128,256], index: 3, kind: input, shape index: {}]   ;;  %s1733_s4 = inlined_call_operand.hbm [shape: bf16[128,128], index: 4, kind: input, shape index: {}]   ;;  %s1734_s5 = inlined_call_operand.hbm [shape: bf16[128,128], index: 5, kind: input, shape index: {}]   ;;  %s1735_s6 = inlined_call_operand.vmem [shape: f32[1,128], index: 6, kind: input, shape index: {}]   ;;  %s1736_s7 = inlined_call_operand.vmem [shape: f32[1,128], index: 7, kind: input, shape index: {}]   ;;  %s1737_s8 = inlined_call_operand.vmem [shape: f32[1,128], index: 8, kind: input, shape index: {}]   ;;  %s1738_s9 = inlined_call_operand.vmem [shape: f32[1,128], index: 9, kind: input, shape index: {}]   ;;  %s1739_s10 = inlined_call_operand.vmem [shape: f32[1,128], index: 10, kind: input, shape index: {}]   ;;  %s1740_s11 = inlined_call_operand.hbm [shape: f32[16,128], index: 11, kind: output, shape index: {0}]   ;;  %s1741_s12 = inlined_call_operand.hbm [shape: f32[1,16], index: 12, kind: output, shape index: {1}]   ;;  %s1742_s13 = inlined_call_operand.hbm [shape: f32[1,1,128], index: 13, kind: output, shape index: {2}]  }
   0x1   :  { %20 = vsyncpa [#allocation6], 0 }
   0x2   :  { %21 = vsyncpa [#allocation9], 0 }
   0x3   :  { %22 = vsyncpa [#allocation12], 0 }
   0x4   :  { %23 = vsyncpa [#allocation4], 0 }
   0x5   :  { %24 = vsyncpa [#allocation15], 0  ;;  %s1411_s25 = smov [#allocation5]   ;;  %s1201_s29 = scalar_lea.hbm %s1730_s1, 1024 }
   0x6   :  { %s42_s26 = sshll.u32 %s1411_s25, 4  ;;  %p1202_p0 = scmp.ne.s32.totalorder %s1730_s1, %s1201_s29  ;;  %s43_s26 = int_to_ptr.vmem [resolvable:$true] %s42_s26 }
   0x7   :  { %p1205_p1 = scmp.lt.u32.totalorder %s1201_s29, %s1730_s1 }
   0x9   :  { %p1207_p2 = pnand %p1205_p1, %p1202_p0 }
   0xb   :  { %1210 = shalt.err (!%p1207_p2)
}
   0xc   :  { %s1211_s17 = scalar_lea.vmem %s43_s26, 1024  ;;  %p1216_p4 = scmp.lt.s32.totalorder %s43_s26, %s43_s26 }
   0xd   :  { %p1212_p3 = scmp.ne.s32.totalorder %s43_s26, %s1211_s17  ;;  %p1217_p5 = scmp.lt.s32.totalorder %s1211_s17, %s1211_s17 }
   0xf   :  { %p1218_p6 = por %p1217_p5, %p1216_p4 }
  0x11   :  { %p1219_p7 = pnand %p1218_p6, %p1212_p3 }
  0x13   :  { %1222 = shalt.err (!%p1219_p7)
}
  0x14   :  { %s1412_s18 = smov 64   ;;  %s1413_s19 = smov 4  }
  0x15   :  { %48 = dma.hbm_to_vmem [thread:$0]  %s1730_s1, 1024, %s43_s26, [#allocation6], %s1412_s18, %s1412_s18, %s1413_s19  }
  0x16   :  { %s1414_s22 = smov [#allocation8]   ;;  %s1415_s24 = smov [#allocation2]  }
  0x17   :  { %s66_s23 = sshll.u32 %s1414_s22, 4  ;;  %s30_s25 = sshll.u32 %s1415_s24, 4  ;;  %s67_s23 = int_to_ptr.vmem [resolvable:$true] %s66_s23  ;;  %s31_s25 = int_to_ptr.vmem [resolvable:$true] %s30_s25 }
  0x18   :  { %s1223_s29 = scalar_lea.hbm %s1732_s3, 2048 }
  0x19   :  { %p1224_p8 = scmp.ne.s32.totalorder %s1732_s3, %s1223_s29  ;;  %p1227_p9 = scmp.lt.u32.totalorder %s1223_s29, %s1732_s3 }
  0x1b   :  { %p1229_p10 = pnand %p1227_p9, %p1224_p8 }
  0x1d   :  { %1232 = shalt.err (!%p1229_p10)
}
  0x1e   :  { %s1233_s1 = scalar_lea.vmem %s67_s23, 2048  ;;  %p1238_p12 = scmp.lt.s32.totalorder %s67_s23, %s67_s23 }
  0x1f   :  { %p1234_p11 = scmp.ne.s32.totalorder %s67_s23, %s1233_s1  ;;  %p1239_p13 = scmp.lt.s32.totalorder %s1233_s1, %s1233_s1 }
  0x21   :  { %p1240_p0 = por %p1239_p13, %p1238_p12 }
  0x23   :  { %p1241_p1 = pnand %p1240_p0, %p1234_p11 }
  0x25   :  { %1244 = shalt.err (!%p1241_p1)
}
  0x26   :  { %s1416_s26 = smov 128   ;;  %s1417_s17 = smov 8  }
  0x27   :  { %72 = dma.hbm_to_vmem [thread:$0]  %s1732_s3, 2048, %s67_s23, [#allocation9], %s1416_s26, %s1416_s26, %s1417_s17  }
  0x28   :  { %s1245_s27 = scalar_lea.hbm %s1729_s0, 256 }
  0x29   :  { %p1246_p2 = scmp.ne.s32.totalorder %s1729_s0, %s1245_s27  ;;  %p1249_p3 = scmp.lt.u32.totalorder %s1245_s27, %s1729_s0 }
  0x2b   :  { %p1251_p4 = pnand %p1249_p3, %p1246_p2 }
  0x2d   :  { %1254 = shalt.err (!%p1251_p4)
}
  0x2e   :  { %s1255_s15 = scalar_lea.vmem %s31_s25, 256  ;;  %p1260_p6 = scmp.lt.s32.totalorder %s31_s25, %s31_s25 }
  0x2f   :  { %p1256_p5 = scmp.ne.s32.totalorder %s31_s25, %s1255_s15  ;;  %p1261_p7 = scmp.lt.s32.totalorder %s1255_s15, %s1255_s15 }
  0x31   :  { %p1262_p8 = por %p1261_p7, %p1260_p6 }
  0x33   :  { %p1263_p9 = pnand %p1262_p8, %p1256_p5 }
  0x35   :  { %1266 = shalt.err (!%p1263_p9)
}
  0x36   :  { %36 = dma.hbm_to_vmem [thread:$0]  %s1729_s0, 256, %s31_s25, [#allocation3], %s1416_s26, %s1416_s26, %s1417_s17  }
  0x37   :  { %s1418_s16 = smov [#allocation7]   ;;  %s1419_s20 = smov [#allocation10]  }
  0x38   :  { %s54_s1 = sshll.u32 %s1418_s16, 4  ;;  %s78_s21 = sshll.u32 %s1419_s20, 4  ;;  %s55_s1 = int_to_ptr.vmem [resolvable:$true] %s54_s1  ;;  %s79_s21 = int_to_ptr.vmem [resolvable:$true] %s78_s21 }
  0x39   :  { %s1267_s27 = scalar_lea.hbm %s1731_s2, 1024 }
  0x3a   :  { %p1268_p10 = scmp.ne.s32.totalorder %s1731_s2, %s1267_s27  ;;  %p1271_p11 = scmp.lt.u32.totalorder %s1267_s27, %s1731_s2 }
  0x3c   :  { %p1273_p12 = pnand %p1271_p11, %p1268_p10 }
  0x3e   :  { %1276 = shalt.err (!%p1273_p12)
}
  0x3f   :  { %s1277_s0 = scalar_lea.vmem %s55_s1, 1024  ;;  %p1282_p0 = scmp.lt.s32.totalorder %s55_s1, %s55_s1 }
  0x40   :  { %p1278_p13 = scmp.ne.s32.totalorder %s55_s1, %s1277_s0  ;;  %p1283_p1 = scmp.lt.s32.totalorder %s1277_s0, %s1277_s0 }
  0x42   :  { %p1284_p2 = por %p1283_p1, %p1282_p0 }
  0x44   :  { %p1285_p3 = pnand %p1284_p2, %p1278_p13 }
  0x46   :  { %1288 = shalt.err (!%p1285_p3)
}
  0x47   :  { %60 = dma.hbm_to_vmem [thread:$0]  %s1731_s2, 1024, %s55_s1, [#allocation6], %s1412_s18, %s1412_s18, %s1413_s19  }
  0x48   :  { %s1289_s16 = scalar_lea.hbm %s1733_s4, 1024 }
  0x49   :  { %p1290_p4 = scmp.ne.s32.totalorder %s1733_s4, %s1289_s16  ;;  %p1293_p5 = scmp.lt.u32.totalorder %s1289_s16, %s1733_s4 }
  0x4b   :  { %p1295_p6 = pnand %p1293_p5, %p1290_p4 }
  0x4d   :  { %1298 = shalt.err (!%p1295_p6)
}
  0x4e   :  { %s1299_s28 = scalar_lea.vmem %s79_s21, 1024  ;;  %p1304_p8 = scmp.lt.s32.totalorder %s79_s21, %s79_s21 }
  0x4f   :  { %p1300_p7 = scmp.ne.s32.totalorder %s79_s21, %s1299_s28  ;;  %p1305_p9 = scmp.lt.s32.totalorder %s1299_s28, %s1299_s28 }
  0x51   :  { %p1306_p10 = por %p1305_p9, %p1304_p8 }
  0x53   :  { %p1307_p11 = pnand %p1306_p10, %p1300_p7 }
  0x55   :  { %1310 = shalt.err (!%p1307_p11)
}
  0x56   :  { %84 = dma.hbm_to_vmem [thread:$0]  %s1733_s4, 1024, %s79_s21, [#allocation9], %s1412_s18, %s1412_s18, %s1413_s19  }
  0x57   :  { %s1420_s29 = smov [#allocation11]   ;;  %s1311_s25 = scalar_lea.hbm %s1734_s5, 1024 }
  0x58   :  { %s90_s30 = sshll.u32 %s1420_s29, 4  ;;  %p1312_p12 = scmp.ne.s32.totalorder %s1734_s5, %s1311_s25  ;;  %s91_s30 = int_to_ptr.vmem [resolvable:$true] %s90_s30 }
  0x59   :  { %p1315_p13 = scmp.lt.u32.totalorder %s1311_s25, %s1734_s5 }
  0x5b   :  { %p1317_p0 = pnand %p1315_p13, %p1312_p12 }
  0x5d   :  { %1320 = shalt.err (!%p1317_p0)
}
  0x5e   :  { %s1321_s20 = scalar_lea.vmem %s91_s30, 1024  ;;  %p1326_p2 = scmp.lt.s32.totalorder %s91_s30, %s91_s30 }
  0x5f   :  { %p1322_p1 = scmp.ne.s32.totalorder %s91_s30, %s1321_s20  ;;  %p1327_p3 = scmp.lt.s32.totalorder %s1321_s20, %s1321_s20 }
  0x61   :  { %p1328_p4 = por %p1327_p3, %p1326_p2 }
  0x63   :  { %p1329_p5 = pnand %p1328_p4, %p1322_p1 }
  0x65   :  { %1332 = shalt.err (!%p1329_p5)
}
  0x66   :  { %96 = dma.hbm_to_vmem [thread:$0]  %s1734_s5, 1024, %s91_s30, [#allocation12], %s1412_s18, %s1412_s18, %s1413_s19  }
  0x67   :  { %1399 = dma.done.wait [#allocation3], 256  }
  0x68   :  { %1400 = vsyncadd [#allocation3], 4294967040 }
  0x69   :  { %1401 = dma.done.wait [#allocation6], 2048  }
  0x6a   :  { %1402 = vsyncadd [#allocation6], 4294965248 }
  0x6b   :  { %1403 = dma.done.wait [#allocation9], 3072  }
  0x6c   :  { %1404 = vsyncadd [#allocation9], 4294964224 }
  0x6d   :  { %1405 = dma.done.wait [#allocation12], 1024  }
  0x6e   :  { %1406 = vsyncadd [#allocation12], 4294966272  ;;  %v1421_v0 = vmov 0   ;;  %v1422_v1 = vmov 0.0   ;;  %v1125_v2 = vld [vmem:[#allocation8 + $0x4] ss:$8 sps:$4 sm:$0xff]  }
  0x6f   :  { %257 = vmatprep.mubr.bf16.mxu0 %v1421_v0  ;;  %1029 = vmatprep.subr.bf16.mxu1 %v1422_v1  ;;  %v1127_v3 = vld [vmem:[#allocation8] ss:$8 sps:$4 sm:$0xff]   ;;  %v1128_v4 = vld [vmem:[#allocation8 + $0x14] ss:$8 sps:$4 sm:$0xff]   ;;  %v1130_v5 = vld [vmem:[#allocation8 + $0x10] ss:$8 sps:$4 sm:$0xff]  }
  0x70   :  { %225 = vmatprep.subr.bf16.mxu0 %v1125_v2  ;;  %v1131_v6 = vld [vmem:[#allocation8 + $0x24] ss:$8 sps:$4 sm:$0xff]   ;;  %v1133_v7 = vld [vmem:[#allocation8 + $0x20] ss:$8 sps:$4 sm:$0xff]   ;;  %v1134_v8 = vld [vmem:[#allocation8 + $0x34] ss:$8 sps:$4 sm:$0xff]  }
  0x71   :  { %226 = vmatpush1.bf16.msra.mxu0 %v1127_v3  ;;  %v1136_v9 = vld [vmem:[#allocation8 + $0x30] ss:$8 sps:$4 sm:$0xff]   ;;  %v1137_v10 = vld [vmem:[#allocation8 + $0x44] ss:$8 sps:$4 sm:$0xff]   ;;  %v1139_v13 = vld [vmem:[#allocation8 + $0x40] ss:$8 sps:$4 sm:$0xff]  }
  0x72   :  { %227 = vmatprep.subr.bf16.mxu0 %v1128_v4  ;;  %v1149_v11 = vld [vmem:[#allocation5] sm:$0xff]   ;;  %v1150_v12 = vld [vmem:[#allocation5 + $0x8] sm:$0xff]   ;;  %v1140_v14 = vld [vmem:[#allocation8 + $0x54] ss:$8 sps:$4 sm:$0xff]   ;;  %vm1423_vm0 = vmmov 0   ;;  %s1424_s2 = smov [#allocation13]  }
  0x73   :  { %1030 = vmatpush3.bf16.msra.mxu1 %v1149_v11  ;;  %v1142_v15 = vld [vmem:[#allocation8 + $0x50] ss:$8 sps:$4 sm:$0xff]   ;;  %v1143_v16 = vld [vmem:[#allocation8 + $0x64] ss:$8 sps:$4 sm:$0xff]   ;;  %v1145_v19 = vld [vmem:[#allocation8 + $0x60] ss:$8 sps:$4 sm:$0xff]   ;;  %1045 = vmatprep.mubr.msk.bf16.mxu1 %vm1423_vm0, %v1422_v1 }
  0x74   :  { %1031 = vmatprep.subr.bf16.mxu1 %v1422_v1  ;;  %v1151_v17 = vld [vmem:[#allocation5 + $0x10] sm:$0xff]   ;;  %v1152_v18 = vld [vmem:[#allocation5 + $0x18] sm:$0xff]   ;;  %v1153_v21 = vld [vmem:[#allocation5 + $0x20] sm:$0xff]   ;;  %s893_s1 = sshll.u32 %s1424_s2, 4  ;;  %s1426_s30 = smov [#allocation16]   ;;  %s894_s1 = int_to_ptr.vmem [resolvable:$true] %s893_s1 }
  0x75   :  { %228 = vmatpush1.bf16.msra.mxu0 %v1130_v5  ;;  %v1146_v20 = vld [vmem:[#allocation8 + $0x74] ss:$8 sps:$4 sm:$0xff]   ;;  %v1148_v22 = vld [vmem:[#allocation8 + $0x70] ss:$8 sps:$4 sm:$0xff]   ;;  %v1154_v25 = vld [vmem:[#allocation5 + $0x28] sm:$0xff]   ;;  %s916_s14 = sshll.u32 %s1426_s30, 4  ;;  %p1338_p7 = scmp.lt.s32.totalorder %s894_s1, %s894_s1  ;;  %s1697_s14 = int_to_ptr.vmem [resolvable:$true] %s916_s14 }
  0x76   :  { %229 = vmatprep.subr.bf16.mxu0 %v1131_v6  ;;  %v1591_v23 = vld [vmem:[#allocation2] sm:$0xff]  ;;  %v1593_v24 = vld [vmem:[#allocation2 + $0x8] sm:$0xff]  ;;  %s1333_s0 = scalar_lea.vmem %s894_s1, 256 }
  0x77   :  { %1032 = vmatpush3.bf16.msra.mxu1 %v1150_v12  ;;  %v128_v26 = vpack.c.bf16 %v1593_v24, %v1591_v23  ;;  %v1155_v27 = vld [vmem:[#allocation5 + $0x30] sm:$0xff]   ;;  %v1156_v28 = vld [vmem:[#allocation5 + $0x38] sm:$0xff]   ;;  %v1161_v12 = vld [vmem:[#allocation7 + $0x20] sm:$0xff]   ;;  %p1334_p6 = scmp.ne.s32.totalorder %s894_s1, %s1333_s0  ;;  %p1339_p8 = scmp.lt.s32.totalorder %s1333_s0, %s1333_s0 }
  0x78   :  { %1033 = vmatprep.subr.bf16.mxu1 %v1422_v1  ;;  %v951_v34 = vld [vmem:[%s1739_s10] ss:$0 sm:$0xff]  ;;  %v1160_v11 = vld [vmem:[#allocation7 + $0x18] sm:$0xff]  }
  0x79   :  { %230 = vmatpush1.bf16.msra.mxu0 %v1133_v7  ;;  %p1340_p9 = por %p1339_p8, %p1338_p7 }
  0x7a   :  { %231 = vmatprep.subr.bf16.mxu0 %v1134_v8  ;;  %v1157_v8 = vld [vmem:[#allocation7] sm:$0xff]  }
  0x7b   :  { %1034 = vmatpush3.bf16.msra.mxu1 %v1151_v17  ;;  %p1341_p10 = pnand %p1340_p9, %p1334_p6 }
  0x7c   :  { %1035 = vmatprep.subr.bf16.mxu1 %v1422_v1 }
  0x7d   :  { %232 = vmatpush1.bf16.msra.mxu0 %v1136_v9  ;;  %v1158_v9 = vld [vmem:[#allocation7 + $0x8] sm:$0xff]  }
  0x7e   :  { %233 = vmatprep.subr.bf16.mxu0 %v1137_v10  ;;  %v1159_v10 = vld [vmem:[#allocation7 + $0x10] sm:$0xff]  }
  0x7f   :  { %1036 = vmatpush3.bf16.msra.mxu1 %v1152_v18 }
  0x80   :  { %1037 = vmatprep.subr.bf16.mxu1 %v1422_v1 }
  0x81   :  { %234 = vmatpush1.bf16.msra.mxu0 %v1139_v13  ;;  %v1162_v13 = vld [vmem:[#allocation7 + $0x28] sm:$0xff]  }
  0x82   :  { %235 = vmatprep.subr.bf16.mxu0 %v1140_v14  ;;  %v1163_v14 = vld [vmem:[#allocation7 + $0x30] sm:$0xff]  }
  0x83   :  { %1038 = vmatpush3.bf16.msra.mxu1 %v1153_v21  ;;  %v1166_v21 = vld [vmem:[#allocation10 + $0x8] sm:$0xff]  }
  0x84   :  { %1039 = vmatprep.subr.bf16.mxu1 %v1422_v1 }
  0x85   :  { %236 = vmatpush1.bf16.msra.mxu0 %v1142_v15 }
  0x86   :  { %237 = vmatprep.subr.bf16.mxu0 %v1143_v16 }
  0x87   :  { %1040 = vmatpush3.bf16.msra.mxu1 %v1154_v25  ;;  %v1168_v25 = vld [vmem:[#allocation10 + $0x18] sm:$0xff]  }
  0x88   :  { %1041 = vmatprep.subr.bf16.mxu1 %v1422_v1 }
  0x89   :  { %238 = vmatpush1.bf16.msra.mxu0 %v1145_v19  ;;  %v1164_v19 = vld [vmem:[#allocation7 + $0x38] sm:$0xff]  }
  0x8a   :  { %239 = vmatprep.subr.bf16.mxu0 %v1146_v20  ;;  %v1165_v20 = vld [vmem:[#allocation10] sm:$0xff]  }
  0x8b   :  { %1042 = vmatpush3.bf16.msra.mxu1 %v1155_v27  ;;  %v1170_v27 = vld [vmem:[#allocation10 + $0x28] sm:$0xff]  }
  0x8c   :  { %1043 = vmatprep.subr.bf16.mxu1 %v1422_v1 }
  0x8d   :  { %240 = vmatpush1.bf16.msra.mxu0 %v1148_v22  ;;  %v1167_v22 = vld [vmem:[#allocation10 + $0x10] sm:$0xff]  }
  0x8e   :  { %1049 = vmatprep.subr.bf16.mxu0 %v1422_v1 }
  0x8f   :  { %1044 = vmatpush3.bf16.msra.mxu1 %v1156_v28  ;;  %v1171_v28 = vld [vmem:[#allocation10 + $0x30] sm:$0xff]  }
  0x90   :  { %258 = vmatmul.mubr.bf16.vlgmr.msra.gmra.mrb[0].mxu0 %v128_v26  ;;  %1069 = vmatprep.subr.bf16.mxu1 %v1422_v1  ;;  %v1169_v26 = vld [vmem:[#allocation10 + $0x20] sm:$0xff]  }
  0x91   :  { %1065 = vmatprep.mubr.msk.bf16.mxu0 %vm1423_vm0, %v1422_v1  ;;  %1050 = vmatpush3.bf16.msra.mxu0 %v1157_v8 }
  0x92   :  { %1051 = vmatprep.subr.bf16.mxu0 %v1422_v1 }
  0x95   :  { %1052 = vmatpush3.bf16.msra.mxu0 %v1158_v9 }
  0x96   :  { %1053 = vmatprep.subr.bf16.mxu0 %v1422_v1 }
  0x99   :  { %1054 = vmatpush3.bf16.msra.mxu0 %v1159_v10 }
  0x9a   :  { %1055 = vmatprep.subr.bf16.mxu0 %v1422_v1 }
  0x9d   :  { %1056 = vmatpush3.bf16.msra.mxu0 %v1160_v11 }
  0x9e   :  { %1057 = vmatprep.subr.bf16.mxu0 %v1422_v1 }
  0xa1   :  { %1058 = vmatpush3.bf16.msra.mxu0 %v1161_v12 }
  0xa2   :  { %1059 = vmatprep.subr.bf16.mxu0 %v1422_v1 }
  0xa5   :  { %1060 = vmatpush3.bf16.msra.mxu0 %v1162_v13 }
  0xa6   :  { %1061 = vmatprep.subr.bf16.mxu0 %v1422_v1 }
  0xa9   :  { %1062 = vmatpush3.bf16.msra.mxu0 %v1163_v14 }
  0xaa   :  { %1063 = vmatprep.subr.bf16.mxu0 %v1422_v1 }
  0xad   :  { %1064 = vmatpush3.bf16.msra.mxu0 %v1164_v19  ;;  %v982_v19 = vld [vmem:[%s1736_s7] ss:$0 sm:$0xff] }
  0xae   :  { %1089 = vmatprep.subr.bf16.mxu0 %v1422_v1 }
 0x163   :  { %v259_v29 = vpop.f32.mrb[0].mxu0 }
 0x164   :  { %v1607_v30 = vpop.f32.mrb[1].mxu0 }
 0x165   :  { %v263_v31 = vpop.f32.mrb[2].mxu0 }
 0x166   :  { %v268_v32 = vpack.c.bf16 %v263_v31, %v259_v29  ;;  %v1609_v33 = vpop.f32.mrb[3].mxu0 }
 0x168   :  { %1046 = vmatmul.mubr.bf16.vlgmr.msra.gmra.mrb[0].mxu1 %v268_v32 }
 0x169   :  { %1085 = vmatprep.mubr.msk.bf16.mxu1 %vm1423_vm0, %v1422_v1  ;;  %1070 = vmatpush3.bf16.msra.mxu1 %v1165_v20 }
 0x16a   :  { %1071 = vmatprep.subr.bf16.mxu1 %v1422_v1 }
 0x16d   :  { %1072 = vmatpush3.bf16.msra.mxu1 %v1166_v21 }
 0x16e   :  { %1073 = vmatprep.subr.bf16.mxu1 %v1422_v1 }
 0x171   :  { %1074 = vmatpush3.bf16.msra.mxu1 %v1167_v22 }
 0x172   :  { %1075 = vmatprep.subr.bf16.mxu1 %v1422_v1 }
 0x175   :  { %1076 = vmatpush3.bf16.msra.mxu1 %v1168_v25 }
 0x176   :  { %1077 = vmatprep.subr.bf16.mxu1 %v1422_v1 }
 0x179   :  { %1078 = vmatpush3.bf16.msra.mxu1 %v1169_v26 }
 0x17a   :  { %1079 = vmatprep.subr.bf16.mxu1 %v1422_v1 }
 0x17d   :  { %1080 = vmatpush3.bf16.msra.mxu1 %v1170_v27 }
 0x17e   :  { %1081 = vmatprep.subr.bf16.mxu1 %v1422_v1 }
 0x181   :  { %1082 = vmatpush3.bf16.msra.mxu1 %v1171_v28 }
 0x182   :  { %1083 = vmatprep.subr.bf16.mxu1 %v1422_v1 }
 0x23b   :  { %v374_v35 = vpop.f32.mrb[0].mxu1 }
 0x23c   :  { %v375_v36 = vadd.f32 %v951_v34, %v374_v35  ;;  %v1047_v37 = vpop.f32.mrb[1].mxu1 }
 0x23d   :  { %v377_v38 = vpop.f32.mrb[2].mxu1 }
 0x23e   :  { %381 = vmax.xlane.f32.xlu0 %v375_v36  ;;  %v1048_v39 = vpop.f32.mrb[3].mxu1  ;;  %v378_v40 = vadd.f32 %v951_v34, %v377_v38 }
 0x242   :  { %383 = vmax.xlane.f32.xlu0 %v378_v40 }
 0x2cb   :  { %v382_v41 = vpop.xlane.xlu0 %381 }
 0x2cc   :  { %v385_v42 = vsub.f32 %v375_v36, %v382_v41 }
 0x2ce   :  { %v387_v43 = vmul.f32 1.442695, %v385_v42 }
 0x2cf   :  { %v384_v44 = vpop.xlane.xlu0 %383 }
 0x2d0   :  { %1181 = vpow2.f32 %v387_v43  ;;  %v386_v45 = vsub.f32 %v378_v40, %v384_v44  ;;  %v1172_v43 = vld [vmem:[#allocation10 + $0x38] sm:$0xff]  }
 0x2d1   :  { %1084 = vmatpush3.bf16.msra.mxu1 %v1172_v43 }
 0x2d2   :  { %v389_v46 = vmul.f32 1.442695, %v386_v45 }
 0x2d4   :  { %1183 = vpow2.f32 %v389_v46 }
 0x2da   :  { %v1182_v47 = vpop.eup %1181 }
 0x2db   :  { %391 = vadd.xlane.f32.xlu1 %v1182_v47 }
 0x2de   :  { %v1184_v48 = vpop.eup %1183 }
 0x2df   :  { %393 = vadd.xlane.f32.xlu1 %v1184_v48 }
 0x368   :  { %v392_v49 = vpop.xlane.xlu1 %391 }
 0x369   :  { %1185 = vrcp.f32 %v392_v49 }
 0x36c   :  { %v394_v50 = vpop.xlane.xlu1 %393 }
 0x36d   :  { %1187 = vrcp.f32 %v394_v50 }
 0x373   :  { %v1186_v51 = vpop.eup %1185 }
 0x374   :  { %v397_v52 = vmul.f32 %v1186_v51, %v392_v49  ;;  %v1173_v49 = vld [vmem:[#allocation11] sm:$0xff]  }
 0x376   :  { %v399_v53 = vsub.f32 2.0, %v397_v52  ;;  %v1176_v52 = vld [vmem:[#allocation11 + $0x18] sm:$0xff]  }
 0x377   :  { %v1188_v54 = vpop.eup %1187 }
 0x378   :  { %v1616_v55 = vmul.f32 %v1186_v51, %v399_v53  ;;  %v398_v56 = vmul.f32 %v1188_v54, %v394_v50  ;;  %v1174_v50 = vld [vmem:[#allocation11 + $0x8] sm:$0xff]   ;;  %v1175_v51 = vld [vmem:[#allocation11 + $0x10] sm:$0xff]   ;;  %v1177_v53 = vld [vmem:[#allocation11 + $0x20] sm:$0xff]  }
 0x37a   :  { %v1619_v57 = vmul.f32 %v1182_v47, %v1616_v55  ;;  %v400_v58 = vsub.f32 2.0, %v398_v56  ;;  %v1179_v56 = vld [vmem:[#allocation11 + $0x30] sm:$0xff]  }
 0x37c   :  { %v1621_v59 = vmul.f32 %v1188_v54, %v400_v58  ;;  %vm405_vm1 = vcmp.ge.f32.partialorder %v1619_v57, %v1616_v55  ;;  %v1178_v54 = vld [vmem:[#allocation11 + $0x28] sm:$0xff]  }
 0x37d   :  { %v407_v60 = vsel %vm405_vm1, -1.0, %v1619_v57 }
 0x37e   :  { %v1627_v61 = vmul.f32 %v1184_v48, %v1621_v59  ;;  %409 = vmax.xlane.f32.xlu0 %v407_v60 }
 0x380   :  { %vm406_vm2 = vcmp.ge.f32.partialorder %v1627_v61, %v1621_v59  ;;  %v969_v32 = vpack.c.bf16 %v1627_v61, %v1619_v57 }
 0x381   :  { %v408_v62 = vsel %vm406_vm2, -1.0, %v1627_v61 }
 0x382   :  { %411 = vmax.xlane.f32.xlu1 %v408_v62 }
 0x40b   :  { %v410_v63 = vpop.xlane.xlu0 %409 }
 0x40c   :  { %vm413_vm3 = vcmp.ge.f32.partialorder %v407_v60, %v410_v63 }
 0x40d   :  { %v415_v0 = vsel %vm413_vm3, -1.0, %v407_v60  ;;  %v979_v60 = vld [vmem:[%s1735_s6] ss:$0 sm:$0xff] }
 0x40e   :  { %417 = vmax.xlane.f32.xlu0 %v415_v0 }
 0x40f   :  { %v412_v2 = vpop.xlane.xlu1 %411 }
 0x410   :  { %vm414_vm4 = vcmp.ge.f32.partialorder %v408_v62, %v412_v2 }
 0x411   :  { %v416_v3 = vsel %vm414_vm4, -1.0, %v408_v62 }
 0x412   :  { %419 = vmax.xlane.f32.xlu1 %v416_v3 }
 0x49b   :  { %v418_v4 = vpop.xlane.xlu0 %417 }
 0x49c   :  { %vm421_vm5 = vcmp.ge.f32.partialorder %v415_v0, %v418_v4 }
 0x49d   :  { %v423_v5 = vsel %vm421_vm5, -1.0, %v415_v0 }
 0x49e   :  { %425 = vmax.xlane.f32.xlu0 %v423_v5 }
 0x49f   :  { %v420_v6 = vpop.xlane.xlu1 %419 }
 0x4a0   :  { %vm422_vm6 = vcmp.ge.f32.partialorder %v416_v3, %v420_v6 }
 0x4a1   :  { %v424_v7 = vsel %vm422_vm6, -1.0, %v416_v3 }
 0x4a2   :  { %427 = vmax.xlane.f32.xlu1 %v424_v7 }
 0x52b   :  { %v426_v15 = vpop.xlane.xlu0 %425 }
 0x52c   :  { %vm429_vm7 = vcmp.ge.f32.partialorder %v423_v5, %v426_v15 }
 0x52d   :  { %v431_v16 = vsel %vm429_vm7, -1.0, %v423_v5 }
 0x52e   :  { %433 = vmax.xlane.f32.xlu0 %v431_v16 }
 0x52f   :  { %v428_v17 = vpop.xlane.xlu1 %427 }
 0x530   :  { %vm430_vm8 = vcmp.ge.f32.partialorder %v424_v7, %v428_v17 }
 0x531   :  { %v432_v18 = vsel %vm430_vm8, -1.0, %v424_v7 }
 0x532   :  { %435 = vmax.xlane.f32.xlu1 %v432_v18 }
 0x5bb   :  { %v434_v29 = vpop.xlane.xlu0 %433 }
 0x5bc   :  { %vm437_vm9 = vcmp.ge.f32.partialorder %v1619_v57, %v434_v29 }
 0x5bd   :  { %v439_v34 = vsel %vm437_vm9, %v1619_v57, 0.0  ;;  %v1180_v57 = vld [vmem:[#allocation11 + $0x38] sm:$0xff]  }
 0x5bf   :  { %v436_v31 = vpop.xlane.xlu1 %435 }
 0x5c0   :  { %vm438_vm10 = vcmp.ge.f32.partialorder %v1627_v61, %v436_v31 }
 0x5c1   :  { %v440_v35 = vsel %vm438_vm10, %v1627_v61, 0.0  ;;  %vm968_vm11 = vmpackc.low %vm438_vm10, %vm437_vm9 }
 0x5c2   :  { %v880_v36 = vadd.f32 %v440_v35, %v439_v34  ;;  %1066 = vmatmul.mubr.msk.bf16.vlgmr.msra.gmra.mrb[4].mxu0 %vm968_vm11, %v969_v32 }
 0x5c3   :  { %1105 = vmatprep.mubr.msk.bf16.mxu0 %vm1423_vm0, %v1422_v1  ;;  %1090 = vmatpush3.bf16.msra.mxu0 %v1173_v49 }
 0x5c4   :  { %v881_v37 = vrot.slane %v880_v36, 4  ;;  %1091 = vmatprep.subr.bf16.mxu0 %v1422_v1 }
 0x5c6   :  { %v882_v38 = vadd.f32 %v881_v37, %v880_v36 }
 0x5c7   :  { %1092 = vmatpush3.bf16.msra.mxu0 %v1174_v50  ;;  %v992_v50 = vld [vmem:[%s1738_s9] ss:$0 sm:$0xff] }
 0x5c8   :  { %v883_v39 = vrot.slane %v882_v38, 2  ;;  %1093 = vmatprep.subr.bf16.mxu0 %v1422_v1 }
 0x5ca   :  { %v884_v40 = vadd.f32 %v883_v39, %v882_v38 }
 0x5cb   :  { %1094 = vmatpush3.bf16.msra.mxu0 %v1175_v51 }
 0x5cc   :  { %v885_v41 = vrot.slane %v884_v40, 1  ;;  %1095 = vmatprep.subr.bf16.mxu0 %v1422_v1 }
 0x5ce   :  { %v886_v42 = vadd.f32 %v885_v41, %v884_v40 }
 0x5cf   :  { %1096 = vmatpush3.bf16.msra.mxu0 %v1176_v52 }
 0x5d0   :  { %887 = vst [vmem:[#allocation16] sm:$0x1] %v886_v42  ;;  %1097 = vmatprep.subr.bf16.mxu0 %v1422_v1 }
 0x5d3   :  { %1098 = vmatpush3.bf16.msra.mxu0 %v1177_v53 }
 0x5d4   :  { %1099 = vmatprep.subr.bf16.mxu0 %v1422_v1 }
 0x5d7   :  { %1100 = vmatpush3.bf16.msra.mxu0 %v1178_v54 }
 0x5d8   :  { %1101 = vmatprep.subr.bf16.mxu0 %v1422_v1 }
 0x5db   :  { %1102 = vmatpush3.bf16.msra.mxu0 %v1179_v56 }
 0x5dc   :  { %1103 = vmatprep.subr.bf16.mxu0 %v1422_v1 }
 0x5df   :  { %1104 = vmatpush3.bf16.msra.mxu0 %v1180_v57 }
 0x695   :  { %v540_v44 = vpop.f32.mrb[4].mxu0 }
 0x696   :  { %v1067_v45 = vpop.f32.mrb[5].mxu0 }
 0x697   :  { %v543_v46 = vpop.f32.mrb[6].mxu0 }
 0x698   :  { %v547_v47 = vpack.c.bf16 %v543_v46, %v540_v44  ;;  %v1068_v48 = vpop.f32.mrb[7].mxu0 }
 0x69a   :  { %1086 = vmatmul.mubr.bf16.vlgmr.msra.gmra.mrb[4].mxu1 %v547_v47 }
 0x76d   :  { %v646_v58 = vpop.f32.mrb[4].mxu1 }
 0x76e   :  { %v653_v61 = vadd.f32 %v646_v58, %v1607_v30  ;;  %v1087_v62 = vpop.f32.mrb[5].mxu1 }
 0x76f   :  { %v649_v63 = vpop.f32.mrb[6].mxu1 }
 0x770   :  { %v662_v0 = vadd.f32 %v979_v60, %v653_v61  ;;  %v654_v2 = vadd.f32 %v649_v63, %v1609_v33  ;;  %v1088_v3 = vpop.f32.mrb[7].mxu1 }
 0x772   :  { %v980_v4 = vmul.f32 -1.442695, %v662_v0  ;;  %v663_v5 = vadd.f32 %v979_v60, %v654_v2 }
 0x774   :  { %1189 = vpow2.f32 %v980_v4  ;;  %v981_v6 = vmul.f32 -1.442695, %v663_v5 }
 0x776   :  { %1191 = vpow2.f32 %v981_v6 }
 0x77e   :  { %v1190_v1 = vpop.eup %1189 }
 0x77f   :  { %v670_v7 = vadd.f32 1.0, %v1190_v1 }
 0x780   :  { %v1192_v8 = vpop.eup %1191 }
 0x781   :  { %1193 = vrcp.f32 %v670_v7  ;;  %v671_v9 = vadd.f32 1.0, %v1192_v8 }
 0x783   :  { %1195 = vrcp.f32 %v671_v9 }
 0x78b   :  { %v1194_v10 = vpop.eup %1193 }
 0x78c   :  { %v676_v11 = vmul.f32 %v1194_v10, %v540_v44  ;;  %v678_v30 = vsub.f32 1.0, %v1194_v10 }
 0x78d   :  { %v1196_v12 = vpop.eup %1195 }
 0x78e   :  { %v677_v13 = vmul.f32 %v1196_v12, %v543_v46  ;;  %v679_v14 = vsub.f32 1.0, %v1196_v12  ;;  %v680_v33 = vmul.f32 %v678_v30, %v1591_v23 }
 0x790   :  { %v681_v15 = vmul.f32 %v679_v14, %v1593_v24  ;;  %v682_v16 = vadd.f32 %v680_v33, %v676_v11 }
 0x792   :  { %v683_v17 = vadd.f32 %v681_v15, %v677_v13 }
 0x794   :  { %v684_v18 = vpack.c.bf16 %v683_v17, %v682_v16 }
 0x796   :  { %1106 = vmatmul.mubr.bf16.vlgmr.msra.gmra.mrb[8].mxu0 %v684_v18 }
 0x869   :  { %v790_v20 = vpop.f32.mrb[8].mxu0 }
 0x86a   :  { %v791_v21 = vadd.f32 %v982_v19, %v790_v20  ;;  %v1107_v22 = vpop.f32.mrb[9].mxu0 }
 0x86b   :  { %v793_v25 = vpop.f32.mrb[10].mxu0 }
 0x86c   :  { %v794_v26 = vadd.f32 %v982_v19, %v793_v25  ;;  %797 = vadd.xlane.f32.xlu0 %v791_v21  ;;  %v1108_v27 = vpop.f32.mrb[11].mxu0  ;;  %v804_v28 = vmul.f32 %v791_v21, %v791_v21 }
 0x86e   :  { %799 = vadd.xlane.f32.xlu1 %v794_v26  ;;  %v805_v29 = vmul.f32 %v794_v26, %v794_v26 }
 0x870   :  { %806 = vadd.xlane.f32.xlu0 %v804_v28 }
 0x872   :  { %808 = vadd.xlane.f32.xlu1 %v805_v29 }
 0x89d   :  { %846 = vxpose.xlu0.b32.start [1/2] (short) (narrow) %v1616_v55, 8 }
 0x8a1   :  { %847 = vxpose.xlu0.b32.end [2/2] (short) (narrow) %v1621_v59, 8  ;;  %v991_v59 = vld [vmem:[%s1737_s8] ss:$0 sm:$0xff]  ;;  %s1425_s8 = smov [#allocation14]  }
 0x8a2   :  { %s906_s29 = sshll.u32 %s1425_s8, 4  ;;  %s907_s29 = int_to_ptr.vmem [resolvable:$true] %s906_s29 }
 0x8f9   :  { %v798_v31 = vpop.xlane.xlu0 %797 }
 0x8fa   :  { %v802_v32 = vmul.f32 0.0078125, %v798_v31 }
 0x8fb   :  { %v800_v34 = vpop.xlane.xlu1 %799 }
 0x8fc   :  { %v803_v35 = vmul.f32 0.0078125, %v800_v34  ;;  %v812_v37 = vmul.f32 %v802_v32, %v802_v32  ;;  %v816_v46 = vsub.f32 %v791_v21, %v802_v32 }
 0x8fd   :  { %v807_v36 = vpop.xlane.xlu0 %806 }
 0x8fe   :  { %v810_v38 = vmul.f32 0.0078125, %v807_v36  ;;  %v813_v40 = vmul.f32 %v803_v35, %v803_v35  ;;  %v817_v47 = vsub.f32 %v794_v26, %v803_v35 }
 0x8ff   :  { %v809_v39 = vpop.xlane.xlu1 %808 }
 0x900   :  { %v814_v41 = vsub.f32 %v810_v38, %v812_v37  ;;  %v811_v42 = vmul.f32 0.0078125, %v809_v39 }
 0x902   :  { %v818_v43 = vadd.f32 1e-05, %v814_v41  ;;  %v815_v44 = vsub.f32 %v811_v42, %v813_v40 }
 0x904   :  { %1197 = vrsqrt.f32 %v818_v43  ;;  %v819_v45 = vadd.f32 1e-05, %v815_v44 }
 0x906   :  { %1199 = vrsqrt.f32 %v819_v45 }
 0x90e   :  { %v1198_v55 = vpop.eup %1197 }
 0x90f   :  { %v822_v48 = vmul.f32 %v1198_v55, %v816_v46 }
 0x910   :  { %v1200_v49 = vpop.eup %1199 }
 0x911   :  { %v823_v51 = vmul.f32 %v1200_v49, %v817_v47  ;;  %v831_v52 = vmul.f32 %v991_v59, %v822_v48 }
 0x913   :  { %v832_v53 = vmul.f32 %v991_v59, %v823_v51  ;;  %v840_v54 = vadd.f32 %v992_v50, %v831_v52 }
 0x915   :  { %v841_v56 = vadd.f32 %v992_v50, %v832_v53  ;;  %v842_v57 = vadd.f32 %v840_v54, %v1591_v23 }
 0x917   :  { %v843_v58 = vadd.f32 %v841_v56, %v1593_v24  ;;  %844 = vst [vmem:[#allocation13] sm:$0xff] %v842_v57 }
 0x919   :  { %845 = vst [vmem:[#allocation13 + $0x8] sm:$0xff] %v843_v58 }
 0x91a   :  { %1344 = shalt.err (!%p1341_p10)
}
 0x91b   :  { %s1345_s15 = scalar_lea.hbm %s1740_s11, 256 }
 0x91c   :  { %p1346_p11 = scmp.ne.s32.totalorder %s1740_s11, %s1345_s15  ;;  %p1349_p12 = scmp.lt.u32.totalorder %s1345_s15, %s1740_s11 }
 0x91e   :  { %p1351_p13 = pnand %p1349_p12, %p1346_p11 }
 0x920   :  { %1354 = shalt.err (!%p1351_p13)
}
 0x921   :  { %899 = dma.vmem_to_hbm [thread:$0]  %s894_s1, 256, %s1740_s11, [#allocation4], %s1416_s26, %s1416_s26, %s1417_s17   ;;  %vm878_vm12 = vcmask 122880   ;;  %v862_v23 = vpop.trf.xlu0 }
 0x922   :  { %879 = vst.msk [vmem:[#allocation14] sm:$0x1] %vm878_vm12, %v862_v23  ;;  %s1355_s5 = scalar_lea.vmem %s907_s29, 16  ;;  %s1359_s18 = scalar_lea.vmem %s907_s29, 32 }
 0x923   :  { %p1356_p0 = scmp.ne.s32.totalorder %s907_s29, %s1355_s5  ;;  %p1360_p1 = scmp.lt.s32.totalorder %s907_s29, %s907_s29 }
 0x924   :  { %p1361_p2 = scmp.lt.s32.totalorder %s1359_s18, %s1355_s5 }
 0x926   :  { %p1362_p3 = por %p1361_p2, %p1360_p1 }
 0x928   :  { %p1363_p4 = pnand %p1362_p3, %p1356_p0 }
 0x92a   :  { %1366 = shalt.err (!%p1363_p4)
}
 0x92b   :  { %s1367_s6 = scalar_lea.hbm %s1741_s12, 16 }
 0x92c   :  { %p1368_p5 = scmp.ne.s32.totalorder %s1741_s12, %s1367_s6  ;;  %p1371_p6 = scmp.lt.u32.totalorder %s1367_s6, %s1741_s12 }
 0x92e   :  { %p1373_p7 = pnand %p1371_p6, %p1368_p5 }
 0x930   :  { %1376 = shalt.err (!%p1373_p7)
}
 0x931   :  { %909 = dma.vmem_to_hbm [thread:$0]  %s907_s29, 16, %s1741_s12, [#allocation15]  }
 0x932   :  { %s1377_s27 = scalar_lea.vmem %s1697_s14, 16  ;;  %s1381_s28 = scalar_lea.vmem %s1697_s14, 32 }
 0x933   :  { %p1378_p8 = scmp.ne.s32.totalorder %s1697_s14, %s1377_s27  ;;  %p1382_p9 = scmp.lt.s32.totalorder %s1697_s14, %s1697_s14 }
 0x934   :  { %p1383_p10 = scmp.lt.s32.totalorder %s1381_s28, %s1377_s27 }
 0x936   :  { %p1384_p11 = por %p1383_p10, %p1382_p9 }
 0x938   :  { %p1385_p12 = pnand %p1384_p11, %p1378_p8 }
 0x93a   :  { %1388 = shalt.err (!%p1385_p12)
}
 0x93b   :  { %s1389_s8 = scalar_lea.hbm %s1742_s13, 16 }
 0x93c   :  { %p1390_p13 = scmp.ne.s32.totalorder %s1742_s13, %s1389_s8  ;;  %p1393_p0 = scmp.lt.u32.totalorder %s1389_s8, %s1742_s13 }
 0x93e   :  { %p1395_p1 = pnand %p1393_p0, %p1390_p13 }
 0x940   :  { %1398 = shalt.err (!%p1395_p1)
}
 0x941   :  { %919 = dma.vmem_to_hbm [thread:$0]  %s1697_s14, 16, %s1742_s13, [#allocation15]  }
 0x942   :  { %1407 = dma.done.wait [#allocation4], 256  }
 0x943   :  { %1408 = vsyncadd [#allocation4], 4294967040 }
 0x944   :  { %1409 = dma.done.wait [#allocation15], 32  }
 0x945   :  { %1410 = vsyncadd [#allocation15], 4294967264 }
 0x946   :  { %929 = vsyncpa [#allocation3], 1 }
 0x947   :  { %930 = vsyncpa [#allocation6], 1 }
 0x948   :  { %931 = vsyncpa [#allocation9], 1 }
 0x949   :  { %932 = vsyncpa [#allocation12], 1 }
 0x94a   :  { %933 = vsyncpa [#allocation4], 1 }
 0x94b   :  { %934 = vsyncpa [#allocation15], 1 }

// kernel: tpu_custom_call.1
= control target key start
LH: loop header
LB: loop body
LE: loop exit
PB: predicated region body
PF: predicated region fallthrough
CT: control target
= control target key end

     0   :  { %19 = vsyncpa [#allocation3], 0  ;;  %s1729_s0 = inlined_call_operand.hbm [shape: f32[16,128], index: 0, kind: input, shape index: {}]   ;;  %s1730_s1 = inlined_call_operand.hbm [shape: bf16[128,128], index: 1, kind: input, shape index: {}]   ;;  %s1731_s2 = inlined_call_operand.hbm [shape: bf16[128,128], index: 2, kind: input, shape index: {}]   ;;  %s1732_s3 = inlined_call_operand.hbm [shape: bf16[128,256], index: 3, kind: input, shape index: {}]   ;;  %s1733_s4 = inlined_call_operand.hbm [shape: bf16[128,128], index: 4, kind: input, shape index: {}]   ;;  %s1734_s5 = inlined_call_operand.hbm [shape: bf16[128,128], index: 5, kind: input, shape index: {}]   ;;  %s1735_s6 = inlined_call_operand.vmem [shape: f32[1,128], index: 6, kind: input, shape index: {}]   ;;  %s1736_s7 = inlined_call_operand.vmem [shape: f32[1,128], index: 7, kind: input, shape index: {}]   ;;  %s1737_s8 = inlined_call_operand.vmem [shape: f32[1,128], index: 8, kind: input, shape index: {}]   ;;  %s1738_s9 = inlined_call_operand.vmem [shape: f32[1,128], index: 9, kind: input, shape index: {}]   ;;  %s1739_s10 = inlined_call_operand.vmem [shape: f32[1,128], index: 10, kind: input, shape index: {}]   ;;  %s1740_s11 = inlined_call_operand.hbm [shape: f32[16,128], index: 11, kind: output, shape index: {0}]   ;;  %s1741_s12 = inlined_call_operand.hbm [shape: f32[1,16], index: 12, kind: output, shape index: {1}]   ;;  %s1742_s13 = inlined_call_operand.hbm [shape: f32[1,1,128], index: 13, kind: output, shape index: {2}]  }
   0x1   :  { %20 = vsyncpa [#allocation6], 0 }
   0x2   :  { %21 = vsyncpa [#allocation9], 0 }
   0x3   :  { %22 = vsyncpa [#allocation12], 0 }
   0x4   :  { %23 = vsyncpa [#allocation4], 0 }
   0x5   :  { %24 = vsyncpa [#allocation15], 0  ;;  %s1411_s25 = smov [#allocation5]   ;;  %s1201_s29 = scalar_lea.hbm %s1730_s1, 1024 }
   0x6   :  { %s42_s26 = sshll.u32 %s1411_s25, 4  ;;  %p1202_p0 = scmp.ne.s32.totalorder %s1730_s1, %s1201_s29  ;;  %s43_s26 = int_to_ptr.vmem [resolvable:$true] %s42_s26 }
   0x7   :  { %p1205_p1 = scmp.lt.u32.totalorder %s1201_s29, %s1730_s1 }
   0x9   :  { %p1207_p2 = pnand %p1205_p1, %p1202_p0 }
   0xb   :  { %1210 = shalt.err (!%p1207_p2)
}
   0xc   :  { %s1211_s17 = scalar_lea.vmem %s43_s26, 1024  ;;  %p1216_p4 = scmp.lt.s32.totalorder %s43_s26, %s43_s26 }
   0xd   :  { %p1212_p3 = scmp.ne.s32.totalorder %s43_s26, %s1211_s17  ;;  %p1217_p5 = scmp.lt.s32.totalorder %s1211_s17, %s1211_s17 }
   0xf   :  { %p1218_p6 = por %p1217_p5, %p1216_p4 }
  0x11   :  { %p1219_p7 = pnand %p1218_p6, %p1212_p3 }
  0x13   :  { %1222 = shalt.err (!%p1219_p7)
}
  0x14   :  { %s1412_s18 = smov 64   ;;  %s1413_s19 = smov 4  }
  0x15   :  { %48 = dma.hbm_to_vmem [thread:$0]  %s1730_s1, 1024, %s43_s26, [#allocation6], %s1412_s18, %s1412_s18, %s1413_s19  }
  0x16   :  { %s1414_s22 = smov [#allocation8]   ;;  %s1415_s24 = smov [#allocation2]  }
  0x17   :  { %s66_s23 = sshll.u32 %s1414_s22, 4  ;;  %s30_s25 = sshll.u32 %s1415_s24, 4  ;;  %s67_s23 = int_to_ptr.vmem [resolvable:$true] %s66_s23  ;;  %s31_s25 = int_to_ptr.vmem [resolvable:$true] %s30_s25 }
  0x18   :  { %s1223_s29 = scalar_lea.hbm %s1732_s3, 2048 }
  0x19   :  { %p1224_p8 = scmp.ne.s32.totalorder %s1732_s3, %s1223_s29  ;;  %p1227_p9 = scmp.lt.u32.totalorder %s1223_s29, %s1732_s3 }
  0x1b   :  { %p1229_p10 = pnand %p1227_p9, %p1224_p8 }
  0x1d   :  { %1232 = shalt.err (!%p1229_p10)
}
  0x1e   :  { %s1233_s1 = scalar_lea.vmem %s67_s23, 2048  ;;  %p1238_p12 = scmp.lt.s32.totalorder %s67_s23, %s67_s23 }
  0x1f   :  { %p1234_p11 = scmp.ne.s32.totalorder %s67_s23, %s1233_s1  ;;  %p1239_p13 = scmp.lt.s32.totalorder %s1233_s1, %s1233_s1 }
  0x21   :  { %p1240_p0 = por %p1239_p13, %p1238_p12 }
  0x23   :  { %p1241_p1 = pnand %p1240_p0, %p1234_p11 }
  0x25   :  { %1244 = shalt.err (!%p1241_p1)
}
  0x26   :  { %s1416_s26 = smov 128   ;;  %s1417_s17 = smov 8  }
  0x27   :  { %72 = dma.hbm_to_vmem [thread:$0]  %s1732_s3, 2048, %s67_s23, [#allocation9], %s1416_s26, %s1416_s26, %s1417_s17  }
  0x28   :  { %s1245_s27 = scalar_lea.hbm %s1729_s0, 256 }
  0x29   :  { %p1246_p2 = scmp.ne.s32.totalorder %s1729_s0, %s1245_s27  ;;  %p1249_p3 = scmp.lt.u32.totalorder %s1245_s27, %s1729_s0 }
  0x2b   :  { %p1251_p4 = pnand %p1249_p3, %p1246_p2 }
  0x2d   :  { %1254 = shalt.err (!%p1251_p4)
}
  0x2e   :  { %s1255_s15 = scalar_lea.vmem %s31_s25, 256  ;;  %p1260_p6 = scmp.lt.s32.totalorder %s31_s25, %s31_s25 }
  0x2f   :  { %p1256_p5 = scmp.ne.s32.totalorder %s31_s25, %s1255_s15  ;;  %p1261_p7 = scmp.lt.s32.totalorder %s1255_s15, %s1255_s15 }
  0x31   :  { %p1262_p8 = por %p1261_p7, %p1260_p6 }
  0x33   :  { %p1263_p9 = pnand %p1262_p8, %p1256_p5 }
  0x35   :  { %1266 = shalt.err (!%p1263_p9)
}
  0x36   :  { %36 = dma.hbm_to_vmem [thread:$0]  %s1729_s0, 256, %s31_s25, [#allocation3], %s1416_s26, %s1416_s26, %s1417_s17  }
  0x37   :  { %s1418_s16 = smov [#allocation7]   ;;  %s1419_s20 = smov [#allocation10]  }
  0x38   :  { %s54_s1 = sshll.u32 %s1418_s16, 4  ;;  %s78_s21 = sshll.u32 %s1419_s20, 4  ;;  %s55_s1 = int_to_ptr.vmem [resolvable:$true] %s54_s1  ;;  %s79_s21 = int_to_ptr.vmem [resolvable:$true] %s78_s21 }
  0x39   :  { %s1267_s27 = scalar_lea.hbm %s1731_s2, 1024 }
  0x3a   :  { %p1268_p10 = scmp.ne.s32.totalorder %s1731_s2, %s1267_s27  ;;  %p1271_p11 = scmp.lt.u32.totalorder %s1267_s27, %s1731_s2 }
  0x3c   :  { %p1273_p12 = pnand %p1271_p11, %p1268_p10 }
  0x3e   :  { %1276 = shalt.err (!%p1273_p12)
}
  0x3f   :  { %s1277_s0 = scalar_lea.vmem %s55_s1, 1024  ;;  %p1282_p0 = scmp.lt.s32.totalorder %s55_s1, %s55_s1 }
  0x40   :  { %p1278_p13 = scmp.ne.s32.totalorder %s55_s1, %s1277_s0  ;;  %p1283_p1 = scmp.lt.s32.totalorder %s1277_s0, %s1277_s0 }
  0x42   :  { %p1284_p2 = por %p1283_p1, %p1282_p0 }
  0x44   :  { %p1285_p3 = pnand %p1284_p2, %p1278_p13 }
  0x46   :  { %1288 = shalt.err (!%p1285_p3)
}
  0x47   :  { %60 = dma.hbm_to_vmem [thread:$0]  %s1731_s2, 1024, %s55_s1, [#allocation6], %s1412_s18, %s1412_s18, %s1413_s19  }
  0x48   :  { %s1289_s16 = scalar_lea.hbm %s1733_s4, 1024 }
  0x49   :  { %p1290_p4 = scmp.ne.s32.totalorder %s1733_s4, %s1289_s16  ;;  %p1293_p5 = scmp.lt.u32.totalorder %s1289_s16, %s1733_s4 }
  0x4b   :  { %p1295_p6 = pnand %p1293_p5, %p1290_p4 }
  0x4d   :  { %1298 = shalt.err (!%p1295_p6)
}
  0x4e   :  { %s1299_s28 = scalar_lea.vmem %s79_s21, 1024  ;;  %p1304_p8 = scmp.lt.s32.totalorder %s79_s21, %s79_s21 }
  0x4f   :  { %p1300_p7 = scmp.ne.s32.totalorder %s79_s21, %s1299_s28  ;;  %p1305_p9 = scmp.lt.s32.totalorder %s1299_s28, %s1299_s28 }
  0x51   :  { %p1306_p10 = por %p1305_p9, %p1304_p8 }
  0x53   :  { %p1307_p11 = pnand %p1306_p10, %p1300_p7 }
  0x55   :  { %1310 = shalt.err (!%p1307_p11)
}
  0x56   :  { %84 = dma.hbm_to_vmem [thread:$0]  %s1733_s4, 1024, %s79_s21, [#allocation9], %s1412_s18, %s1412_s18, %s1413_s19  }
  0x57   :  { %s1420_s29 = smov [#allocation11]   ;;  %s1311_s25 = scalar_lea.hbm %s1734_s5, 1024 }
  0x58   :  { %s90_s30 = sshll.u32 %s1420_s29, 4  ;;  %p1312_p12 = scmp.ne.s32.totalorder %s1734_s5, %s1311_s25  ;;  %s91_s30 = int_to_ptr.vmem [resolvable:$true] %s90_s30 }
  0x59   :  { %p1315_p13 = scmp.lt.u32.totalorder %s1311_s25, %s1734_s5 }
  0x5b   :  { %p1317_p0 = pnand %p1315_p13, %p1312_p12 }
  0x5d   :  { %1320 = shalt.err (!%p1317_p0)
}
  0x5e   :  { %s1321_s20 = scalar_lea.vmem %s91_s30, 1024  ;;  %p1326_p2 = scmp.lt.s32.totalorder %s91_s30, %s91_s30 }
  0x5f   :  { %p1322_p1 = scmp.ne.s32.totalorder %s91_s30, %s1321_s20  ;;  %p1327_p3 = scmp.lt.s32.totalorder %s1321_s20, %s1321_s20 }
  0x61   :  { %p1328_p4 = por %p1327_p3, %p1326_p2 }
  0x63   :  { %p1329_p5 = pnand %p1328_p4, %p1322_p1 }
  0x65   :  { %1332 = shalt.err (!%p1329_p5)
}
  0x66   :  { %96 = dma.hbm_to_vmem [thread:$0]  %s1734_s5, 1024, %s91_s30, [#allocation12], %s1412_s18, %s1412_s18, %s1413_s19  }
  0x67   :  { %1399 = dma.done.wait [#allocation3], 256  }
  0x68   :  { %1400 = vsyncadd [#allocation3], 4294967040 }
  0x69   :  { %1401 = dma.done.wait [#allocation6], 2048  }
  0x6a   :  { %1402 = vsyncadd [#allocation6], 4294965248 }
  0x6b   :  { %1403 = dma.done.wait [#allocation9], 3072  }
  0x6c   :  { %1404 = vsyncadd [#allocation9], 4294964224 }
  0x6d   :  { %1405 = dma.done.wait [#allocation12], 1024  }
  0x6e   :  { %1406 = vsyncadd [#allocation12], 4294966272  ;;  %v1421_v0 = vmov 0   ;;  %v1422_v1 = vmov 0.0   ;;  %v1125_v2 = vld [vmem:[#allocation8 + $0x4] ss:$8 sps:$4 sm:$0xff]  }
  0x6f   :  { %257 = vmatprep.mubr.bf16.mxu0 %v1421_v0  ;;  %1029 = vmatprep.subr.bf16.mxu1 %v1422_v1  ;;  %v1127_v3 = vld [vmem:[#allocation8] ss:$8 sps:$4 sm:$0xff]   ;;  %v1128_v4 = vld [vmem:[#allocation8 + $0x14] ss:$8 sps:$4 sm:$0xff]   ;;  %v1130_v5 = vld [vmem:[#allocation8 + $0x10] ss:$8 sps:$4 sm:$0xff]  }
  0x70   :  { %225 = vmatprep.subr.bf16.mxu0 %v1125_v2  ;;  %v1131_v6 = vld [vmem:[#allocation8 + $0x24] ss:$8 sps:$4 sm:$0xff]   ;;  %v1133_v7 = vld [vmem:[#allocation8 + $0x20] ss:$8 sps:$4 sm:$0xff]   ;;  %v1134_v8 = vld [vmem:[#allocation8 + $0x34] ss:$8 sps:$4 sm:$0xff]  }
  0x71   :  { %226 = vmatpush1.bf16.msra.mxu0 %v1127_v3  ;;  %v1136_v9 = vld [vmem:[#allocation8 + $0x30] ss:$8 sps:$4 sm:$0xff]   ;;  %v1137_v10 = vld [vmem:[#allocation8 + $0x44] ss:$8 sps:$4 sm:$0xff]   ;;  %v1139_v13 = vld [vmem:[#allocation8 + $0x40] ss:$8 sps:$4 sm:$0xff]  }
  0x72   :  { %227 = vmatprep.subr.bf16.mxu0 %v1128_v4  ;;  %v1149_v11 = vld [vmem:[#allocation5] sm:$0xff]   ;;  %v1150_v12 = vld [vmem:[#allocation5 + $0x8] sm:$0xff]   ;;  %v1140_v14 = vld [vmem:[#allocation8 + $0x54] ss:$8 sps:$4 sm:$0xff]   ;;  %vm1423_vm0 = vmmov 0   ;;  %s1424_s2 = smov [#allocation13]  }
  0x73   :  { %1030 = vmatpush3.bf16.msra.mxu1 %v1149_v11  ;;  %v1142_v15 = vld [vmem:[#allocation8 + $0x50] ss:$8 sps:$4 sm:$0xff]   ;;  %v1143_v16 = vld [vmem:[#allocation8 + $0x64] ss:$8 sps:$4 sm:$0xff]   ;;  %v1145_v19 = vld [vmem:[#allocation8 + $0x60] ss:$8 sps:$4 sm:$0xff]   ;;  %1045 = vmatprep.mubr.msk.bf16.mxu1 %vm1423_vm0, %v1422_v1 }
  0x74   :  { %1031 = vmatprep.subr.bf16.mxu1 %v1422_v1  ;;  %v1151_v17 = vld [vmem:[#allocation5 + $0x10] sm:$0xff]   ;;  %v1152_v18 = vld [vmem:[#allocation5 + $0x18] sm:$0xff]   ;;  %v1153_v21 = vld [vmem:[#allocation5 + $0x20] sm:$0xff]   ;;  %s893_s1 = sshll.u32 %s1424_s2, 4  ;;  %s1426_s30 = smov [#allocation16]   ;;  %s894_s1 = int_to_ptr.vmem [resolvable:$true] %s893_s1 }
  0x75   :  { %228 = vmatpush1.bf16.msra.mxu0 %v1130_v5  ;;  %v1146_v20 = vld [vmem:[#allocation8 + $0x74] ss:$8 sps:$4 sm:$0xff]   ;;  %v1148_v22 = vld [vmem:[#allocation8 + $0x70] ss:$8 sps:$4 sm:$0xff]   ;;  %v1154_v25 = vld [vmem:[#allocation5 + $0x28] sm:$0xff]   ;;  %s916_s14 = sshll.u32 %s1426_s30, 4  ;;  %p1338_p7 = scmp.lt.s32.totalorder %s894_s1, %s894_s1  ;;  %s1697_s14 = int_to_ptr.vmem [resolvable:$true] %s916_s14 }
  0x76   :  { %229 = vmatprep.subr.bf16.mxu0 %v1131_v6  ;;  %v1591_v23 = vld [vmem:[#allocation2] sm:$0xff]  ;;  %v1593_v24 = vld [vmem:[#allocation2 + $0x8] sm:$0xff]  ;;  %s1333_s0 = scalar_lea.vmem %s894_s1, 256 }
  0x77   :  { %1032 = vmatpush3.bf16.msra.mxu1 %v1150_v12  ;;  %v128_v26 = vpack.c.bf16 %v1593_v24, %v1591_v23  ;;  %v1155_v27 = vld [vmem:[#allocation5 + $0x30] sm:$0xff]   ;;  %v1156_v28 = vld [vmem:[#allocation5 + $0x38] sm:$0xff]   ;;  %v1161_v12 = vld [vmem:[#allocation7 + $0x20] sm:$0xff]   ;;  %p1334_p6 = scmp.ne.s32.totalorder %s894_s1, %s1333_s0  ;;  %p1339_p8 = scmp.lt.s32.totalorder %s1333_s0, %s1333_s0 }
  0x78   :  { %1033 = vmatprep.subr.bf16.mxu1 %v1422_v1  ;;  %v951_v34 = vld [vmem:[%s1739_s10] ss:$0 sm:$0xff]  ;;  %v1160_v11 = vld [vmem:[#allocation7 + $0x18] sm:$0xff]  }
  0x79   :  { %230 = vmatpush1.bf16.msra.mxu0 %v1133_v7  ;;  %p1340_p9 = por %p1339_p8, %p1338_p7 }
  0x7a   :  { %231 = vmatprep.subr.bf16.mxu0 %v1134_v8  ;;  %v1157_v8 = vld [vmem:[#allocation7] sm:$0xff]  }
  0x7b   :  { %1034 = vmatpush3.bf16.msra.mxu1 %v1151_v17  ;;  %p1341_p10 = pnand %p1340_p9, %p1334_p6 }
  0x7c   :  { %1035 = vmatprep.subr.bf16.mxu1 %v1422_v1 }
  0x7d   :  { %232 = vmatpush1.bf16.msra.mxu0 %v1136_v9  ;;  %v1158_v9 = vld [vmem:[#allocation7 + $0x8] sm:$0xff]  }
  0x7e   :  { %233 = vmatprep.subr.bf16.mxu0 %v1137_v10  ;;  %v1159_v10 = vld [vmem:[#allocation7 + $0x10] sm:$0xff]  }
  0x7f   :  { %1036 = vmatpush3.bf16.msra.mxu1 %v1152_v18 }
  0x80   :  { %1037 = vmatprep.subr.bf16.mxu1 %v1422_v1 }
  0x81   :  { %234 = vmatpush1.bf16.msra.mxu0 %v1139_v13  ;;  %v1162_v13 = vld [vmem:[#allocation7 + $0x28] sm:$0xff]  }
  0x82   :  { %235 = vmatprep.subr.bf16.mxu0 %v1140_v14  ;;  %v1163_v14 = vld [vmem:[#allocation7 + $0x30] sm:$0xff]  }
  0x83   :  { %1038 = vmatpush3.bf16.msra.mxu1 %v1153_v21  ;;  %v1166_v21 = vld [vmem:[#allocation10 + $0x8] sm:$0xff]  }
  0x84   :  { %1039 = vmatprep.subr.bf16.mxu1 %v1422_v1 }
  0x85   :  { %236 = vmatpush1.bf16.msra.mxu0 %v1142_v15 }
  0x86   :  { %237 = vmatprep.subr.bf16.mxu0 %v1143_v16 }
  0x87   :  { %1040 = vmatpush3.bf16.msra.mxu1 %v1154_v25  ;;  %v1168_v25 = vld [vmem:[#allocation10 + $0x18] sm:$0xff]  }
  0x88   :  { %1041 = vmatprep.subr.bf16.mxu1 %v1422_v1 }
  0x89   :  { %238 = vmatpush1.bf16.msra.mxu0 %v1145_v19  ;;  %v1164_v19 = vld [vmem:[#allocation7 + $0x38] sm:$0xff]  }
  0x8a   :  { %239 = vmatprep.subr.bf16.mxu0 %v1146_v20  ;;  %v1165_v20 = vld [vmem:[#allocation10] sm:$0xff]  }
  0x8b   :  { %1042 = vmatpush3.bf16.msra.mxu1 %v1155_v27  ;;  %v1170_v27 = vld [vmem:[#allocation10 + $0x28] sm:$0xff]  }
  0x8c   :  { %1043 = vmatprep.subr.bf16.mxu1 %v1422_v1 }
  0x8d   :  { %240 = vmatpush1.bf16.msra.mxu0 %v1148_v22  ;;  %v1167_v22 = vld [vmem:[#allocation10 + $0x10] sm:$0xff]  }
  0x8e   :  { %1049 = vmatprep.subr.bf16.mxu0 %v1422_v1 }
  0x8f   :  { %1044 = vmatpush3.bf16.msra.mxu1 %v1156_v28  ;;  %v1171_v28 = vld [vmem:[#allocation10 + $0x30] sm:$0xff]  }
  0x90   :  { %258 = vmatmul.mubr.bf16.vlgmr.msra.gmra.mrb[0].mxu0 %v128_v26  ;;  %1069 = vmatprep.subr.bf16.mxu1 %v1422_v1  ;;  %v1169_v26 = vld [vmem:[#allocation10 + $0x20] sm:$0xff]  }
  0x91   :  { %1065 = vmatprep.mubr.msk.bf16.mxu0 %vm1423_vm0, %v1422_v1  ;;  %1050 = vmatpush3.bf16.msra.mxu0 %v1157_v8 }
  0x92   :  { %1051 = vmatprep.subr.bf16.mxu0 %v1422_v1 }
  0x95   :  { %1052 = vmatpush3.bf16.msra.mxu0 %v1158_v9 }
  0x96   :  { %1053 = vmatprep.subr.bf16.mxu0 %v1422_v1 }
  0x99   :  { %1054 = vmatpush3.bf16.msra.mxu0 %v1159_v10 }
  0x9a   :  { %1055 = vmatprep.subr.bf16.mxu0 %v1422_v1 }
  0x9d   :  { %1056 = vmatpush3.bf16.msra.mxu0 %v1160_v11 }
  0x9e   :  { %1057 = vmatprep.subr.bf16.mxu0 %v1422_v1 }
  0xa1   :  { %1058 = vmatpush3.bf16.msra.mxu0 %v1161_v12 }
  0xa2   :  { %1059 = vmatprep.subr.bf16.mxu0 %v1422_v1 }
  0xa5   :  { %1060 = vmatpush3.bf16.msra.mxu0 %v1162_v13 }
  0xa6   :  { %1061 = vmatprep.subr.bf16.mxu0 %v1422_v1 }
  0xa9   :  { %1062 = vmatpush3.bf16.msra.mxu0 %v1163_v14 }
  0xaa   :  { %1063 = vmatprep.subr.bf16.mxu0 %v1422_v1 }
  0xad   :  { %1064 = vmatpush3.bf16.msra.mxu0 %v1164_v19  ;;  %v982_v19 = vld [vmem:[%s1736_s7] ss:$0 sm:$0xff] }
  0xae   :  { %1089 = vmatprep.subr.bf16.mxu0 %v1422_v1 }
 0x163   :  { %v259_v29 = vpop.f32.mrb[0].mxu0 }
 0x164   :  { %v1607_v30 = vpop.f32.mrb[1].mxu0 }
 0x165   :  { %v263_v31 = vpop.f32.mrb[2].mxu0 }
 0x166   :  { %v268_v32 = vpack.c.bf16 %v263_v31, %v259_v29  ;;  %v1609_v33 = vpop.f32.mrb[3].mxu0 }
 0x168   :  { %1046 = vmatmul.mubr.bf16.vlgmr.msra.gmra.mrb[0].mxu1 %v268_v32 }
 0x169   :  { %1085 = vmatprep.mubr.msk.bf16.mxu1 %vm1423_vm0, %v1422_v1  ;;  %1070 = vmatpush3.bf16.msra.mxu1 %v1165_v20 }
 0x16a   :  { %1071 = vmatprep.subr.bf16.mxu1 %v1422_v1 }
 0x16d   :  { %1072 = vmatpush3.bf16.msra.mxu1 %v1166_v21 }
 0x16e   :  { %1073 = vmatprep.subr.bf16.mxu1 %v1422_v1 }
 0x171   :  { %1074 = vmatpush3.bf16.msra.mxu1 %v1167_v22 }
 0x172   :  { %1075 = vmatprep.subr.bf16.mxu1 %v1422_v1 }
 0x175   :  { %1076 = vmatpush3.bf16.msra.mxu1 %v1168_v25 }
 0x176   :  { %1077 = vmatprep.subr.bf16.mxu1 %v1422_v1 }
 0x179   :  { %1078 = vmatpush3.bf16.msra.mxu1 %v1169_v26 }
 0x17a   :  { %1079 = vmatprep.subr.bf16.mxu1 %v1422_v1 }
 0x17d   :  { %1080 = vmatpush3.bf16.msra.mxu1 %v1170_v27 }
 0x17e   :  { %1081 = vmatprep.subr.bf16.mxu1 %v1422_v1 }
 0x181   :  { %1082 = vmatpush3.bf16.msra.mxu1 %v1171_v28 }
 0x182   :  { %1083 = vmatprep.subr.bf16.mxu1 %v1422_v1 }
 0x23b   :  { %v374_v35 = vpop.f32.mrb[0].mxu1 }
 0x23c   :  { %v375_v36 = vadd.f32 %v951_v34, %v374_v35  ;;  %v1047_v37 = vpop.f32.mrb[1].mxu1 }
 0x23d   :  { %v377_v38 = vpop.f32.mrb[2].mxu1 }
 0x23e   :  { %381 = vmax.xlane.f32.xlu0 %v375_v36  ;;  %v1048_v39 = vpop.f32.mrb[3].mxu1  ;;  %v378_v40 = vadd.f32 %v951_v34, %v377_v38 }
 0x242   :  { %383 = vmax.xlane.f32.xlu0 %v378_v40 }
 0x2cb   :  { %v382_v41 = vpop.xlane.xlu0 %381 }
 0x2cc   :  { %v385_v42 = vsub.f32 %v375_v36, %v382_v41 }
 0x2ce   :  { %v387_v43 = vmul.f32 1.442695, %v385_v42 }
 0x2cf   :  { %v384_v44 = vpop.xlane.xlu0 %383 }
 0x2d0   :  { %1181 = vpow2.f32 %v387_v43  ;;  %v386_v45 = vsub.f32 %v378_v40, %v384_v44  ;;  %v1172_v43 = vld [vmem:[#allocation10 + $0x38] sm:$0xff]  }
 0x2d1   :  { %1084 = vmatpush3.bf16.msra.mxu1 %v1172_v43 }
 0x2d2   :  { %v389_v46 = vmul.f32 1.442695, %v386_v45 }
 0x2d4   :  { %1183 = vpow2.f32 %v389_v46 }
 0x2da   :  { %v1182_v47 = vpop.eup %1181 }
 0x2db   :  { %391 = vadd.xlane.f32.xlu1 %v1182_v47 }
 0x2de   :  { %v1184_v48 = vpop.eup %1183 }
 0x2df   :  { %393 = vadd.xlane.f32.xlu1 %v1184_v48 }
 0x368   :  { %v392_v49 = vpop.xlane.xlu1 %391 }
 0x369   :  { %1185 = vrcp.f32 %v392_v49 }
 0x36c   :  { %v394_v50 = vpop.xlane.xlu1 %393 }
 0x36d   :  { %1187 = vrcp.f32 %v394_v50 }
 0x373   :  { %v1186_v51 = vpop.eup %1185 }
 0x374   :  { %v397_v52 = vmul.f32 %v1186_v51, %v392_v49  ;;  %v1173_v49 = vld [vmem:[#allocation11] sm:$0xff]  }
 0x376   :  { %v399_v53 = vsub.f32 2.0, %v397_v52  ;;  %v1176_v52 = vld [vmem:[#allocation11 + $0x18] sm:$0xff]  }
 0x377   :  { %v1188_v54 = vpop.eup %1187 }
 0x378   :  { %v1616_v55 = vmul.f32 %v1186_v51, %v399_v53  ;;  %v398_v56 = vmul.f32 %v1188_v54, %v394_v50  ;;  %v1174_v50 = vld [vmem:[#allocation11 + $0x8] sm:$0xff]   ;;  %v1175_v51 = vld [vmem:[#allocation11 + $0x10] sm:$0xff]   ;;  %v1177_v53 = vld [vmem:[#allocation11 + $0x20] sm:$0xff]  }
 0x37a   :  { %v1619_v57 = vmul.f32 %v1182_v47, %v1616_v55  ;;  %v400_v58 = vsub.f32 2.0, %v398_v56  ;;  %v1179_v56 = vld [vmem:[#allocation11 + $0x30] sm:$0xff]  }
 0x37c   :  { %v1621_v59 = vmul.f32 %v1188_v54, %v400_v58  ;;  %vm405_vm1 = vcmp.ge.f32.partialorder %v1619_v57, %v1616_v55  ;;  %v1178_v54 = vld [vmem:[#allocation11 + $0x28] sm:$0xff]  }
 0x37d   :  { %v407_v60 = vsel %vm405_vm1, -1.0, %v1619_v57 }
 0x37e   :  { %v1627_v61 = vmul.f32 %v1184_v48, %v1621_v59  ;;  %409 = vmax.xlane.f32.xlu0 %v407_v60 }
 0x380   :  { %vm406_vm2 = vcmp.ge.f32.partialorder %v1627_v61, %v1621_v59  ;;  %v969_v32 = vpack.c.bf16 %v1627_v61, %v1619_v57 }
 0x381   :  { %v408_v62 = vsel %vm406_vm2, -1.0, %v1627_v61 }
 0x382   :  { %411 = vmax.xlane.f32.xlu1 %v408_v62 }
 0x40b   :  { %v410_v63 = vpop.xlane.xlu0 %409 }
 0x40c   :  { %vm413_vm3 = vcmp.ge.f32.partialorder %v407_v60, %v410_v63 }
 0x40d   :  { %v415_v0 = vsel %vm413_vm3, -1.0, %v407_v60  ;;  %v979_v60 = vld [vmem:[%s1735_s6] ss:$0 sm:$0xff] }
 0x40e   :  { %417 = vmax.xlane.f32.xlu0 %v415_v0 }
 0x40f   :  { %v412_v2 = vpop.xlane.xlu1 %411 }
 0x410   :  { %vm414_vm4 = vcmp.ge.f32.partialorder %v408_v62, %v412_v2 }
 0x411   :  { %v416_v3 = vsel %vm414_vm4, -1.0, %v408_v62 }
 0x412   :  { %419 = vmax.xlane.f32.xlu1 %v416_v3 }
 0x49b   :  { %v418_v4 = vpop.xlane.xlu0 %417 }
 0x49c   :  { %vm421_vm5 = vcmp.ge.f32.partialorder %v415_v0, %v418_v4 }
 0x49d   :  { %v423_v5 = vsel %vm421_vm5, -1.0, %v415_v0 }
 0x49e   :  { %425 = vmax.xlane.f32.xlu0 %v423_v5 }
 0x49f   :  { %v420_v6 = vpop.xlane.xlu1 %419 }
 0x4a0   :  { %vm422_vm6 = vcmp.ge.f32.partialorder %v416_v3, %v420_v6 }
 0x4a1   :  { %v424_v7 = vsel %vm422_vm6, -1.0, %v416_v3 }
 0x4a2   :  { %427 = vmax.xlane.f32.xlu1 %v424_v7 }
 0x52b   :  { %v426_v15 = vpop.xlane.xlu0 %425 }
 0x52c   :  { %vm429_vm7 = vcmp.ge.f32.partialorder %v423_v5, %v426_v15 }
 0x52d   :  { %v431_v16 = vsel %vm429_vm7, -1.0, %v423_v5 }
 0x52e   :  { %433 = vmax.xlane.f32.xlu0 %v431_v16 }
 0x52f   :  { %v428_v17 = vpop.xlane.xlu1 %427 }
 0x530   :  { %vm430_vm8 = vcmp.ge.f32.partialorder %v424_v7, %v428_v17 }
 0x531   :  { %v432_v18 = vsel %vm430_vm8, -1.0, %v424_v7 }
 0x532   :  { %435 = vmax.xlane.f32.xlu1 %v432_v18 }
 0x5bb   :  { %v434_v29 = vpop.xlane.xlu0 %433 }
 0x5bc   :  { %vm437_vm9 = vcmp.ge.f32.partialorder %v1619_v57, %v434_v29 }
 0x5bd   :  { %v439_v34 = vsel %vm437_vm9, %v1619_v57, 0.0  ;;  %v1180_v57 = vld [vmem:[#allocation11 + $0x38] sm:$0xff]  }
 0x5bf   :  { %v436_v31 = vpop.xlane.xlu1 %435 }
 0x5c0   :  { %vm438_vm10 = vcmp.ge.f32.partialorder %v1627_v61, %v436_v31 }
 0x5c1   :  { %v440_v35 = vsel %vm438_vm10, %v1627_v61, 0.0  ;;  %vm968_vm11 = vmpackc.low %vm438_vm10, %vm437_vm9 }
 0x5c2   :  { %v880_v36 = vadd.f32 %v440_v35, %v439_v34  ;;  %1066 = vmatmul.mubr.msk.bf16.vlgmr.msra.gmra.mrb[4].mxu0 %vm968_vm11, %v969_v32 }
 0x5c3   :  { %1105 = vmatprep.mubr.msk.bf16.mxu0 %vm1423_vm0, %v1422_v1  ;;  %1090 = vmatpush3.bf16.msra.mxu0 %v1173_v49 }
 0x5c4   :  { %v881_v37 = vrot.slane %v880_v36, 4  ;;  %1091 = vmatprep.subr.bf16.mxu0 %v1422_v1 }
 0x5c6   :  { %v882_v38 = vadd.f32 %v881_v37, %v880_v36 }
 0x5c7   :  { %1092 = vmatpush3.bf16.msra.mxu0 %v1174_v50  ;;  %v992_v50 = vld [vmem:[%s1738_s9] ss:$0 sm:$0xff] }
 0x5c8   :  { %v883_v39 = vrot.slane %v882_v38, 2  ;;  %1093 = vmatprep.subr.bf16.mxu0 %v1422_v1 }
 0x5ca   :  { %v884_v40 = vadd.f32 %v883_v39, %v882_v38 }
 0x5cb   :  { %1094 = vmatpush3.bf16.msra.mxu0 %v1175_v51 }
 0x5cc   :  { %v885_v41 = vrot.slane %v884_v40, 1  ;;  %1095 = vmatprep.subr.bf16.mxu0 %v1422_v1 }
 0x5ce   :  { %v886_v42 = vadd.f32 %v885_v41, %v884_v40 }
 0x5cf   :  { %1096 = vmatpush3.bf16.msra.mxu0 %v1176_v52 }
 0x5d0   :  { %887 = vst [vmem:[#allocation16] sm:$0x1] %v886_v42  ;;  %1097 = vmatprep.subr.bf16.mxu0 %v1422_v1 }
 0x5d3   :  { %1098 = vmatpush3.bf16.msra.mxu0 %v1177_v53 }
 0x5d4   :  { %1099 = vmatprep.subr.bf16.mxu0 %v1422_v1 }
 0x5d7   :  { %1100 = vmatpush3.bf16.msra.mxu0 %v1178_v54 }
 0x5d8   :  { %1101 = vmatprep.subr.bf16.mxu0 %v1422_v1 }
 0x5db   :  { %1102 = vmatpush3.bf16.msra.mxu0 %v1179_v56 }
 0x5dc   :  { %1103 = vmatprep.subr.bf16.mxu0 %v1422_v1 }
 0x5df   :  { %1104 = vmatpush3.bf16.msra.mxu0 %v1180_v57 }
 0x695   :  { %v540_v44 = vpop.f32.mrb[4].mxu0 }
 0x696   :  { %v1067_v45 = vpop.f32.mrb[5].mxu0 }
 0x697   :  { %v543_v46 = vpop.f32.mrb[6].mxu0 }
 0x698   :  { %v547_v47 = vpack.c.bf16 %v543_v46, %v540_v44  ;;  %v1068_v48 = vpop.f32.mrb[7].mxu0 }
 0x69a   :  { %1086 = vmatmul.mubr.bf16.vlgmr.msra.gmra.mrb[4].mxu1 %v547_v47 }
 0x76d   :  { %v646_v58 = vpop.f32.mrb[4].mxu1 }
 0x76e   :  { %v653_v61 = vadd.f32 %v646_v58, %v1607_v30  ;;  %v1087_v62 = vpop.f32.mrb[5].mxu1 }
 0x76f   :  { %v649_v63 = vpop.f32.mrb[6].mxu1 }
 0x770   :  { %v662_v0 = vadd.f32 %v979_v60, %v653_v61  ;;  %v654_v2 = vadd.f32 %v649_v63, %v1609_v33  ;;  %v1088_v3 = vpop.f32.mrb[7].mxu1 }
 0x772   :  { %v980_v4 = vmul.f32 -1.442695, %v662_v0  ;;  %v663_v5 = vadd.f32 %v979_v60, %v654_v2 }
 0x774   :  { %1189 = vpow2.f32 %v980_v4  ;;  %v981_v6 = vmul.f32 -1.442695, %v663_v5 }
 0x776   :  { %1191 = vpow2.f32 %v981_v6 }
 0x77e   :  { %v1190_v1 = vpop.eup %1189 }
 0x77f   :  { %v670_v7 = vadd.f32 1.0, %v1190_v1 }
 0x780   :  { %v1192_v8 = vpop.eup %1191 }
 0x781   :  { %1193 = vrcp.f32 %v670_v7  ;;  %v671_v9 = vadd.f32 1.0, %v1192_v8 }
 0x783   :  { %1195 = vrcp.f32 %v671_v9 }
 0x78b   :  { %v1194_v10 = vpop.eup %1193 }
 0x78c   :  { %v676_v11 = vmul.f32 %v1194_v10, %v540_v44  ;;  %v678_v30 = vsub.f32 1.0, %v1194_v10 }
 0x78d   :  { %v1196_v12 = vpop.eup %1195 }
 0x78e   :  { %v677_v13 = vmul.f32 %v1196_v12, %v543_v46  ;;  %v679_v14 = vsub.f32 1.0, %v1196_v12  ;;  %v680_v33 = vmul.f32 %v678_v30, %v1591_v23 }
 0x790   :  { %v681_v15 = vmul.f32 %v679_v14, %v1593_v24  ;;  %v682_v16 = vadd.f32 %v680_v33, %v676_v11 }
 0x792   :  { %v683_v17 = vadd.f32 %v681_v15, %v677_v13 }
 0x794   :  { %v684_v18 = vpack.c.bf16 %v683_v17, %v682_v16 }
 0x796   :  { %1106 = vmatmul.mubr.bf16.vlgmr.msra.gmra.mrb[8].mxu0 %v684_v18 }
 0x869   :  { %v790_v20 = vpop.f32.mrb[8].mxu0 }
 0x86a   :  { %v791_v21 = vadd.f32 %v982_v19, %v790_v20  ;;  %v1107_v22 = vpop.f32.mrb[9].mxu0 }
 0x86b   :  { %v793_v25 = vpop.f32.mrb[10].mxu0 }
 0x86c   :  { %v794_v26 = vadd.f32 %v982_v19, %v793_v25  ;;  %797 = vadd.xlane.f32.xlu0 %v791_v21  ;;  %v1108_v27 = vpop.f32.mrb[11].mxu0  ;;  %v804_v28 = vmul.f32 %v791_v21, %v791_v21 }
 0x86e   :  { %799 = vadd.xlane.f32.xlu1 %v794_v26  ;;  %v805_v29 = vmul.f32 %v794_v26, %v794_v26 }
 0x870   :  { %806 = vadd.xlane.f32.xlu0 %v804_v28 }
 0x872   :  { %808 = vadd.xlane.f32.xlu1 %v805_v29 }
 0x89d   :  { %846 = vxpose.xlu0.b32.start [1/2] (short) (narrow) %v1616_v55, 8 }
 0x8a1   :  { %847 = vxpose.xlu0.b32.end [2/2] (short) (narrow) %v1621_v59, 8  ;;  %v991_v59 = vld [vmem:[%s1737_s8] ss:$0 sm:$0xff]  ;;  %s1425_s8 = smov [#allocation14]  }
 0x8a2   :  { %s906_s29 = sshll.u32 %s1425_s8, 4  ;;  %s907_s29 = int_to_ptr.vmem [resolvable:$true] %s906_s29 }
 0x8f9   :  { %v798_v31 = vpop.xlane.xlu0 %797 }
 0x8fa   :  { %v802_v32 = vmul.f32 0.0078125, %v798_v31 }
 0x8fb   :  { %v800_v34 = vpop.xlane.xlu1 %799 }
 0x8fc   :  { %v803_v35 = vmul.f32 0.0078125, %v800_v34  ;;  %v812_v37 = vmul.f32 %v802_v32, %v802_v32  ;;  %v816_v46 = vsub.f32 %v791_v21, %v802_v32 }
 0x8fd   :  { %v807_v36 = vpop.xlane.xlu0 %806 }
 0x8fe   :  { %v810_v38 = vmul.f32 0.0078125, %v807_v36  ;;  %v813_v40 = vmul.f32 %v803_v35, %v803_v35  ;;  %v817_v47 = vsub.f32 %v794_v26, %v803_v35 }
 0x8ff   :  { %v809_v39 = vpop.xlane.xlu1 %808 }
 0x900   :  { %v814_v41 = vsub.f32 %v810_v38, %v812_v37  ;;  %v811_v42 = vmul.f32 0.0078125, %v809_v39 }
 0x902   :  { %v818_v43 = vadd.f32 1e-05, %v814_v41  ;;  %v815_v44 = vsub.f32 %v811_v42, %v813_v40 }
 0x904   :  { %1197 = vrsqrt.f32 %v818_v43  ;;  %v819_v45 = vadd.f32 1e-05, %v815_v44 }
 0x906   :  { %1199 = vrsqrt.f32 %v819_v45 }
 0x90e   :  { %v1198_v55 = vpop.eup %1197 }
 0x90f   :  { %v822_v48 = vmul.f32 %v1198_v55, %v816_v46 }
 0x910   :  { %v1200_v49 = vpop.eup %1199 }
 0x911   :  { %v823_v51 = vmul.f32 %v1200_v49, %v817_v47  ;;  %v831_v52 = vmul.f32 %v991_v59, %v822_v48 }
 0x913   :  { %v832_v53 = vmul.f32 %v991_v59, %v823_v51  ;;  %v840_v54 = vadd.f32 %v992_v50, %v831_v52 }
 0x915   :  { %v841_v56 = vadd.f32 %v992_v50, %v832_v53  ;;  %v842_v57 = vadd.f32 %v840_v54, %v1591_v23 }
 0x917   :  { %v843_v58 = vadd.f32 %v841_v56, %v1593_v24  ;;  %844 = vst [vmem:[#allocation13] sm:$0xff] %v842_v57 }
 0x919   :  { %845 = vst [vmem:[#allocation13 + $0x8] sm:$0xff] %v843_v58 }
 0x91a   :  { %1344 = shalt.err (!%p1341_p10)
}
 0x91b   :  { %s1345_s15 = scalar_lea.hbm %s1740_s11, 256 }
 0x91c   :  { %p1346_p11 = scmp.ne.s32.totalorder %s1740_s11, %s1345_s15  ;;  %p1349_p12 = scmp.lt.u32.totalorder %s1345_s15, %s1740_s11 }
 0x91e   :  { %p1351_p13 = pnand %p1349_p12, %p1346_p11 }
 0x920   :  { %1354 = shalt.err (!%p1351_p13)
}
 0x921   :  { %899 = dma.vmem_to_hbm [thread:$0]  %s894_s1, 256, %s1740_s11, [#allocation4], %s1416_s26, %s1416_s26, %s1417_s17   ;;  %vm878_vm12 = vcmask 122880   ;;  %v862_v23 = vpop.trf.xlu0 }
 0x922   :  { %879 = vst.msk [vmem:[#allocation14] sm:$0x1] %vm878_vm12, %v862_v23  ;;  %s1355_s5 = scalar_lea.vmem %s907_s29, 16  ;;  %s1359_s18 = scalar_lea.vmem %s907_s29, 32 }
 0x923   :  { %p1356_p0 = scmp.ne.s32.totalorder %s907_s29, %s1355_s5  ;;  %p1360_p1 = scmp.lt.s32.totalorder %s907_s29, %s907_s29 }
 0x924   :  { %p1361_p2 = scmp.lt.s32.totalorder %s1359_s18, %s1355_s5 }
 0x926   :  { %p1362_p3 = por %p1361_p2, %p1360_p1 }
 0x928   :  { %p1363_p4 = pnand %p1362_p3, %p1356_p0 }
 0x92a   :  { %1366 = shalt.err (!%p1363_p4)
}
 0x92b   :  { %s1367_s6 = scalar_lea.hbm %s1741_s12, 16 }
 0x92c   :  { %p1368_p5 = scmp.ne.s32.totalorder %s1741_s12, %s1367_s6  ;;  %p1371_p6 = scmp.lt.u32.totalorder %s1367_s6, %s1741_s12 }
 0x92e   :  { %p1373_p7 = pnand %p1371_p6, %p1368_p5 }
 0x930   :  { %1376 = shalt.err (!%p1373_p7)
}
 0x931   :  { %909 = dma.vmem_to_hbm [thread:$0]  %s907_s29, 16, %s1741_s12, [#allocation15]  }
 0x932   :  { %s1377_s27 = scalar_lea.vmem %s1697_s14, 16  ;;  %s1381_s28 = scalar_lea.vmem %s1697_s14, 32 }
 0x933   :  { %p1378_p8 = scmp.ne.s32.totalorder %s1697_s14, %s1377_s27  ;;  %p1382_p9 = scmp.lt.s32.totalorder %s1697_s14, %s1697_s14 }
 0x934   :  { %p1383_p10 = scmp.lt.s32.totalorder %s1381_s28, %s1377_s27 }
 0x936   :  { %p1384_p11 = por %p1383_p10, %p1382_p9 }
 0x938   :  { %p1385_p12 = pnand %p1384_p11, %p1378_p8 }
 0x93a   :  { %1388 = shalt.err (!%p1385_p12)
}
 0x93b   :  { %s1389_s8 = scalar_lea.hbm %s1742_s13, 16 }
 0x93c   :  { %p1390_p13 = scmp.ne.s32.totalorder %s1742_s13, %s1389_s8  ;;  %p1393_p0 = scmp.lt.u32.totalorder %s1389_s8, %s1742_s13 }
 0x93e   :  { %p1395_p1 = pnand %p1393_p0, %p1390_p13 }
 0x940   :  { %1398 = shalt.err (!%p1395_p1)
}
 0x941   :  { %919 = dma.vmem_to_hbm [thread:$0]  %s1697_s14, 16, %s1742_s13, [#allocation15]  }
 0x942   :  { %1407 = dma.done.wait [#allocation4], 256  }
 0x943   :  { %1408 = vsyncadd [#allocation4], 4294967040 }
 0x944   :  { %1409 = dma.done.wait [#allocation15], 32  }
 0x945   :  { %1410 = vsyncadd [#allocation15], 4294967264 }
 0x946   :  { %929 = vsyncpa [#allocation3], 1 }
 0x947   :  { %930 = vsyncpa [#allocation6], 1 }
 0x948   :  { %931 = vsyncpa [#allocation9], 1 }
 0x949   :  { %932 = vsyncpa [#allocation12], 1 }
 0x94a   :  { %933 = vsyncpa [#allocation4], 1 }
 0x94b   :  { %934 = vsyncpa [#allocation15], 1 }

</bundles_post_ra>
